<compile_context>
chip_gen: v5e
topology: v5e:2x2
jax: 0.10.0
libtpu: 0.0.40
codegen_flags: <defaults>
</compile_context>

<pallas_src>
import jax
import jax.numpy as jnp
from jax.experimental import pallas as pl
from jax.experimental.pallas import tpu as pltpu

P = 16  # 4x4 pooled output positions, row-major p = j*4 + k


def _spab_kernel(x_ref, w1big_ref, bias_ref, w2big_ref, o_ref):
    # x_ref:     (Bt, C*H*W)        lane-dense input slab (native NCHW rows)
    # w1big_ref: (C*H*W, mid*16)    folded [pool4x4 * pyramid-mix * BN-scale * conv1]
    # bias_ref:  (1, mid*16)        folded eval-mode BatchNorm bias
    # w2big_ref: (mid*16, Cout*16)  second 1x1 conv, lane-structured (block-identity over p)
    # o_ref:     (Bt, Cout*16)      lane-dense output slab
    z = jnp.dot(x_ref[...], w1big_ref[...], preferred_element_type=jnp.float32)
    z = jnp.maximum(z + bias_ref[...], 0.0)
    y = jnp.dot(z, w2big_ref[...], preferred_element_type=jnp.float32)
    o_ref[...] = jax.nn.sigmoid(y).astype(o_ref.dtype)


def _padded_bytes(rows, cols, itemsize):
    """VMEM footprint of a (rows, cols) block after (8, 128) sublane/lane padding."""
    return (-(-rows // 8) * 8) * (-(-cols // 128) * 128) * itemsize


def _vmem_limit_bytes():
    """Generation-aware scoped-VMEM limit (~half of physical: 64 MiB v5e/v6e, 32 MiB v7x)."""
    try:
        cap = int(pltpu.get_tpu_info().vmem_capacity_bytes)
    except Exception:
        cap = 64 * 1024 * 1024  # conservative fallback (v7x per-core physical VMEM)
    return min(cap // 2, 96 * 1024 * 1024)


def _choose_batch_tile(b, chw, itemsize, x_budget_bytes):
    """Largest batch tile whose double-buffered, padding-aware x block fits the budget.
    Prefers >=4 grid steps (2 per v7x TensorCore) when blocks stay >= 2 MiB, and always
    keeps >=2 pipelined grid steps when the batch allows.  Candidates are divisors of B
    that are multiples of 8 (sublane alignment) plus B itself (full-dim block)."""
    def blk(bt):
        return _padded_bytes(bt, chw, itemsize)

    cands = sorted({bt for bt in range(8, b + 1, 8) if b % bt == 0} | {b})
    ok = [bt for bt in cands if 2 * blk(bt) <= x_budget_bytes] or [cands[0]]
    big4 = [bt for bt in ok if b // bt >= 4 and blk(bt) >= 2 * 1024 * 1024]
    if big4:
        return max(big4)
    multi = [bt for bt in ok if b // bt >= 2]
    return max(multi) if multi else max(ok)


def spab_forward(x, spa_w, w1, w2, bn_gamma, bn_beta, bn_mean, bn_var, eps=1e-5):
    B, C, H, W = x.shape
    assert H % 4 == 0 and W % 4 == 0, "adaptive 4x4 pool assumes H, W divisible by 4"
    hs, ws = H // 4, W // 4
    mid, Cout = w1.shape[0], w2.shape[0]
    f32 = jnp.float32
    CHW = C * H * W

    # ---- fold eval-mode BatchNorm into a scale (merged into conv1) and a bias ----
    inv_std = 1.0 / jnp.sqrt(bn_var.astype(f32) + eps)
    scale = bn_gamma.astype(f32) * inv_std                                    # (mid,)
    bias = bn_beta.astype(f32) - bn_mean.astype(f32) * scale                  # (mid,)

    # ---- exact-mean 4x4 adaptive pooling over (H, W), flattened hw -> p = j*4 + k ----
    jidx = jnp.arange(H) // hs
    kidx = jnp.arange(W) // ws
    p_of_hw = (jidx[:, None] * 4 + kidx[None, :]).reshape(H * W)
    pool = (p_of_hw[:, None] == jnp.arange(P)[None, :]).astype(f32) / (hs * ws)   # (H*W, 16)

    # ---- spatial-pyramid mixing matrix M (16,16): w0*I + w1*2x2-group-mean + w2*global-mean ----
    jj = jnp.repeat(jnp.arange(4), 4)
    kk = jnp.tile(jnp.arange(4), 4)
    same = jnp.eye(P, dtype=f32)
    grp = (((jj[:, None] // 2) == (jj[None, :] // 2)) &
           ((kk[:, None] // 2) == (kk[None, :] // 2))).astype(f32) / 4.0
    glob = jnp.full((P, P), 1.0 / P, dtype=f32)
    spa_w = jnp.asarray(spa_w, f32).reshape(3)
    M = spa_w[0] * same + spa_w[1] * grp + spa_w[2] * glob                     # symmetric

    # ---- fold pool * M * BN-scale * conv1 into w1big[c*H*W + hw, m*16 + p] ----
    pool_mix = pool @ M                                                        # (H*W, 16)
    w1s = scale[:, None] * w1.astype(f32)                                      # (mid, C)
    w1big = (w1s.T[:, None, :, None] * pool_mix[None, :, None, :]).reshape(CHW, mid * P)
    w1big = w1big.astype(x.dtype)      # MXU operand dtype matched to x (bf16 stays bf16)

    # ---- fold the second 1x1 conv into w2big[m*16 + p, o*16 + q] = w2[o, m] * (p == q) ----
    eye_p = jnp.eye(P, dtype=f32)
    w2big = (w2.astype(f32).T[:, None, :, None] * eye_p[None, :, None, :]).reshape(mid * P, Cout * P)

    bias_row = jnp.repeat(bias, P).reshape(1, mid * P)                         # lane index m*16+p

    # ---- free (contiguous) reshape of the native NCHW input; no transpose, no HBM copy ----
    x2 = x.reshape(B, CHW)
    itemsize = x2.dtype.itemsize

    # ---- generation-aware VMEM budgeting and padding-aware batch tiling ----
    vmem_limit = _vmem_limit_bytes()
    const_bytes = 2 * (_padded_bytes(CHW, mid * P, itemsize)
                       + _padded_bytes(mid * P, Cout * P, 4)
                       + _padded_bytes(1, mid * P, 4))
    x_budget = max(vmem_limit - const_bytes - 4 * 1024 * 1024, 2 * 1024 * 1024)
    Bt = _choose_batch_tile(B, CHW, itemsize, x_budget)
    n_tiles = B // Bt

    flops = 2 * B * CHW * mid * P + 2 * B * mid * P * Cout * P
    bytes_accessed = (B * CHW + B * Cout * P + CHW * mid * P) * itemsize + mid * P * Cout * P * 4

    out2 = pl.pallas_call(
        _spab_kernel,
        out_shape=jax.ShapeDtypeStruct((B, Cout * P), x.dtype),
        grid_spec=pltpu.PrefetchScalarGridSpec(
            num_scalar_prefetch=0,
            grid=(n_tiles,),
            in_specs=[
                pl.BlockSpec((Bt, CHW), lambda i: (i, 0)),              # x slab (varies per step)
                pl.BlockSpec((CHW, mid * P), lambda i: (0, 0)),         # constants: fetched once
                pl.BlockSpec((1, mid * P), lambda i: (0, 0)),
                pl.BlockSpec((mid * P, Cout * P), lambda i: (0, 0)),
            ],
            out_specs=pl.BlockSpec((Bt, Cout * P), lambda i: (i, 0)),
        ),
        compiler_params=pltpu.CompilerParams(
            dimension_semantics=("parallel",),
            vmem_limit_bytes=vmem_limit,
        ),
        cost_estimate=pl.CostEstimate(
            flops=int(flops),
            transcendentals=int(B * Cout * P),
            bytes_accessed=int(bytes_accessed),
        ),
    )(x2, w1big, bias_row, w2big)

    # Output lane index is o*16 + j*4 + k, so NCHW is a free reshape of the output slab.
    return out2.reshape(B, Cout, 4, 4)


def ref_forward(x, spa_w, w1, w2, bn_gamma, bn_beta, bn_mean, bn_var, eps=1e-5):
    """Pure-JAX reference mirroring the PyTorch module (eval-mode BN)."""
    B, C, H, W = x.shape

    def pool(k):
        return x.reshape(B, C, k, H // k, k, W // k).mean(axis=(3, 5))

    y4 = pool(4)                                               # (B,C,4,4)
    y2 = pool(2)                                               # (B,C,2,2)
    y1 = pool(1)                                               # (B,C,1,1)
    y2u = jnp.repeat(jnp.repeat(y2, 2, axis=2), 2, axis=3)     # nearest x2
    y1u = jnp.broadcast_to(y1, (B, C, 4, 4))                   # nearest x4
    y = spa_w[0] * y4 + spa_w[1] * y2u + spa_w[2] * y1u
    z1 = jnp.einsum('mc,bcij->bmij', w1, y)
    z1 = ((z1 - bn_mean[None, :, None, None]) /
          jnp.sqrt(bn_var + eps)[None, :, None, None] *
          bn_gamma[None, :, None, None] + bn_beta[None, :, None, None])
    z1 = jnp.maximum(z1, 0.0)
    z2 = jnp.einsum('om,bmij->boij', w2, z1)
    return jax.nn.sigmoid(z2)


if __name__ == "__main__":
    # SPABLayer(inchannel=16, channel=32, reduction=16) -> mid = 2
    B, C, H, W = 2, 16, 16, 16
    Cout, reduction = 32, 16
    mid = Cout // reduction

    key = jax.random.PRNGKey(0)
    k = jax.random.split(key, 8)
    x = jax.random.normal(k[0], (B, C, H, W), jnp.float32)
    spa_w = jax.random.normal(k[1], (3,), jnp.float32) * 0.5 + 1.0   # Parameter(ones(1,3,1,1,1)) perturbed
    w1 = jax.random.normal(k[2], (mid, C), jnp.float32) * 0.2        # Conv2d(C, mid, 1, bias=False)
    w2 = jax.random.normal(k[3], (Cout, mid), jnp.float32) * 0.2     # Conv2d(mid, Cout, 1, bias=False)
    bn_gamma = jax.random.uniform(k[4], (mid,), jnp.float32, 0.5, 1.5)
    bn_beta = jax.random.normal(k[5], (mid,), jnp.float32) * 0.1
    bn_mean = jax.random.normal(k[6], (mid,), jnp.float32) * 0.1
    bn_var = jax.random.uniform(k[7], (mid,), jnp.float32, 0.5, 1.5)

    out = spab_forward(x, spa_w, w1, w2, bn_gamma, bn_beta, bn_mean, bn_var)
    out = jax.block_until_ready(out)

    ref = ref_forward(x, spa_w, w1, w2, bn_gamma, bn_beta, bn_mean, bn_var)
    assert out.shape == (B, Cout, 4, 4), out.shape
    err = float(jnp.max(jnp.abs(out - ref)))
    assert jnp.allclose(out, ref, atol=1e-3, rtol=1e-3), err

    print("KERNEL_OK")
</pallas_src>

<mosaic_0001>
module attributes {stable_mosaic.version = 11 : i64} {
  func.func @_spab_kernel(%arg0: i32, %arg1: memref<2x4096xf32, #tpu.memory_space<vmem>>, %arg2: memref<4096x32xf32, #tpu.memory_space<vmem>>, %arg3: memref<1x32xf32, #tpu.memory_space<vmem>>, %arg4: memref<32x512xf32, #tpu.memory_space<vmem>>, %arg5: memref<2x512xf32, #tpu.memory_space<vmem>>) attributes {dimension_semantics = [#tpu.dimension_semantics<parallel>], iteration_bounds = array<i64: 1>, scalar_prefetch = 0 : i64, scratch_operands = 0 : i64, tpu.core_type = #tpu.core_type<tc>, window_params = [{transform_indices = @transform_0, window_bounds = array<i64: 2, 4096>}, {pipeline_mode = #tpu.pipeline_mode<synchronous>, transform_indices = @transform_1, window_bounds = array<i64: 4096, 32>}, {pipeline_mode = #tpu.pipeline_mode<synchronous>, transform_indices = @transform_2, window_bounds = array<i64: 1, 32>}, {pipeline_mode = #tpu.pipeline_mode<synchronous>, transform_indices = @transform_3, window_bounds = array<i64: 32, 512>}, {transform_indices = @transform_4, window_bounds = array<i64: 2, 512>}]} {
    %c0 = arith.constant 0 : index
    %c0_0 = arith.constant 0 : index
    %0 = vector.load %arg1[%c0, %c0_0] : memref<2x4096xf32, #tpu.memory_space<vmem>>, vector<2x4096xf32>
    %c0_1 = arith.constant 0 : index
    %c0_2 = arith.constant 0 : index
    %1 = vector.load %arg2[%c0_1, %c0_2] : memref<4096x32xf32, #tpu.memory_space<vmem>>, vector<4096x32xf32>
    %cst = arith.constant dense<0.000000e+00> : vector<2x32xf32>
    %2 = tpu.matmul %0, %1, %cst {dimension_numbers = #tpu.dot_dimension_numbers<[1], [0], [0], [1], [0, 0, 1, 1], [], []>} : vector<2x4096xf32>, vector<4096x32xf32>, vector<2x32xf32> -> vector<2x32xf32>
    %c0_3 = arith.constant 0 : index
    %c0_4 = arith.constant 0 : index
    %3 = vector.load %arg3[%c0_3, %c0_4] : memref<1x32xf32, #tpu.memory_space<vmem>>, vector<1x32xf32>
    %4 = vector.broadcast %3 : vector<1x32xf32> to vector<2x32xf32>
    %5 = arith.addf %2, %4 : vector<2x32xf32>
    %cst_5 = arith.constant 0.000000e+00 : f32
    %6 = vector.broadcast %cst_5 : f32 to vector<2x32xf32>
    %7 = arith.maximumf %5, %6 : vector<2x32xf32>
    %c0_6 = arith.constant 0 : index
    %c0_7 = arith.constant 0 : index
    %8 = vector.load %arg4[%c0_6, %c0_7] : memref<32x512xf32, #tpu.memory_space<vmem>>, vector<32x512xf32>
    %cst_8 = arith.constant dense<0.000000e+00> : vector<2x512xf32>
    %9 = tpu.matmul %7, %8, %cst_8 {dimension_numbers = #tpu.dot_dimension_numbers<[1], [0], [0], [1], [0, 0, 1, 1], [], []>} : vector<2x32xf32>, vector<32x512xf32>, vector<2x512xf32> -> vector<2x512xf32>
    %10 = arith.negf %9 : vector<2x512xf32>
    %11 = math.exp %10 : vector<2x512xf32>
    %cst_9 = arith.constant 1.000000e+00 : f32
    %12 = vector.broadcast %cst_9 : f32 to vector<2x512xf32>
    %13 = arith.addf %12, %11 : vector<2x512xf32>
    %14 = arith.divf %12, %13 : vector<2x512xf32>
    %c0_10 = arith.constant 0 : index
    %c0_11 = arith.constant 0 : index
    %15 = vector.load %arg5[%c0_10, %c0_11] : memref<2x512xf32, #tpu.memory_space<vmem>>, vector<2x512xf32>
    tpu.vector_store %arg5[%c0_10, %c0_11], %14 {strides = array<i32>} : memref<2x512xf32, #tpu.memory_space<vmem>>, vector<2x512xf32>,
    return
  }
  func.func @transform_0(%arg0: i32) -> (i32, i32) {
    %c0_i32 = arith.constant 0 : i32
    %c0_i32_0 = arith.constant 0 : i32
    return %arg0, %c0_i32 : i32, i32
  }
  func.func @transform_1(%arg0: i32) -> (i32, i32) {
    %c0_i32 = arith.constant 0 : i32
    %c0_i32_0 = arith.constant 0 : i32
    %c0_i32_1 = arith.constant 0 : i32
    return %c0_i32, %c0_i32_0 : i32, i32
  }
  func.func @transform_2(%arg0: i32) -> (i32, i32) {
    %c0_i32 = arith.constant 0 : i32
    %c0_i32_0 = arith.constant 0 : i32
    %c0_i32_1 = arith.constant 0 : i32
    return %c0_i32, %c0_i32_0 : i32, i32
  }
  func.func @transform_3(%arg0: i32) -> (i32, i32) {
    %c0_i32 = arith.constant 0 : i32
    %c0_i32_0 = arith.constant 0 : i32
    %c0_i32_1 = arith.constant 0 : i32
    return %c0_i32, %c0_i32_0 : i32, i32
  }
  func.func @transform_4(%arg0: i32) -> (i32, i32) {
    %c0_i32 = arith.constant 0 : i32
    %c0_i32_0 = arith.constant 0 : i32
    return %arg0, %c0_i32 : i32, i32
  }
}

</mosaic_0001>

<bundles_post_ra>
// kernel: tpu_custom_call.1
= control target key start
LH: loop header
LB: loop body
LE: loop exit
PB: predicated region body
PF: predicated region fallthrough
CT: control target
= control target key end

     0   :  { %s3235_s0 = inlined_call_operand.vmem [shape: f32[2,4096], index: 0, kind: input, shape index: {}]   ;;  %s3236_s1 = inlined_call_operand.vmem [shape: f32[4096,32], index: 1, kind: input, shape index: {}]   ;;  %s3237_s2 = inlined_call_operand.vmem [shape: f32[1,32], index: 2, kind: input, shape index: {}]   ;;  %s3238_s3 = inlined_call_operand.vmem [shape: f32[32,512], index: 3, kind: input, shape index: {}]   ;;  %s3239_s4 = inlined_call_operand.hbm [shape: f32[2,512], index: 4, kind: output, shape index: {}]  }
   0x1   :  { %v41_v0 = vld [vmem:[%s3236_s1 + $0x78] sm:$0xff]  ;;  %v40_v2 = vld [vmem:[%s3236_s1 + $0x70] sm:$0xff]  ;;  %v39_v6 = vld [vmem:[%s3236_s1 + $0x68] sm:$0xff] }
   0x2   :  { %v73_v1 = vld [vmem:[%s3236_s1 + $0x178] sm:$0xff]  ;;  %623 = vmatpush.msra.mxu0 %v41_v0  ;;  %v72_v4 = vld [vmem:[%s3236_s1 + $0x170] sm:$0xff]  ;;  %v71_v8 = vld [vmem:[%s3236_s1 + $0x168] sm:$0xff] }
   0x3   :  { %663 = vmatpush.msra.mxu2 %v73_v1  ;;  %v57_v3 = vld [vmem:[%s3236_s1 + $0xf8] sm:$0xff]  ;;  %v56_v7 = vld [vmem:[%s3236_s1 + $0xf0] sm:$0xff]  ;;  %v55_v10 = vld [vmem:[%s3236_s1 + $0xe8] sm:$0xff] }
   0x4   :  { %v89_v5 = vld [vmem:[%s3236_s1 + $0x1f8] sm:$0xff]  ;;  %643 = vmatpush.msra.mxu1 %v57_v3  ;;  %624 = vmatpush.msra.mxu0 %v40_v2  ;;  %v88_v9 = vld [vmem:[%s3236_s1 + $0x1f0] sm:$0xff]  ;;  %v38_v11 = vld [vmem:[%s3236_s1 + $0x60] sm:$0xff] }
   0x5   :  { %683 = vmatpush.msra.mxu3 %v89_v5  ;;  %664 = vmatpush.msra.mxu2 %v72_v4  ;;  %v70_v12 = vld [vmem:[%s3236_s1 + $0x160] sm:$0xff]  ;;  %v87_v13 = vld [vmem:[%s3236_s1 + $0x1e8] sm:$0xff]  ;;  %v37_v16 = vld [vmem:[%s3236_s1 + $0x58] sm:$0xff] }
   0x6   :  { %644 = vmatpush.msra.mxu1 %v56_v7  ;;  %625 = vmatpush.msra.mxu0 %v39_v6  ;;  %v54_v14 = vld [vmem:[%s3236_s1 + $0xe0] sm:$0xff]  ;;  %v69_v17 = vld [vmem:[%s3236_s1 + $0x158] sm:$0xff]  ;;  %v36_v20 = vld [vmem:[%s3236_s1 + $0x50] sm:$0xff] }
   0x7   :  { %684 = vmatpush.msra.mxu3 %v88_v9  ;;  %665 = vmatpush.msra.mxu2 %v71_v8  ;;  %v86_v15 = vld [vmem:[%s3236_s1 + $0x1e0] sm:$0xff]  ;;  %v53_v18 = vld [vmem:[%s3236_s1 + $0xd8] sm:$0xff]  ;;  %v68_v21 = vld [vmem:[%s3236_s1 + $0x150] sm:$0xff] }
   0x8   :  { %645 = vmatpush.msra.mxu1 %v55_v10  ;;  %626 = vmatpush.msra.mxu0 %v38_v11  ;;  %v85_v19 = vld [vmem:[%s3236_s1 + $0x1d8] sm:$0xff]  ;;  %v52_v22 = vld [vmem:[%s3236_s1 + $0xd0] sm:$0xff]  ;;  %v35_v24 = vld [vmem:[%s3236_s1 + $0x48] sm:$0xff] }
   0x9   :  { %685 = vmatpush.msra.mxu3 %v87_v13  ;;  %666 = vmatpush.msra.mxu2 %v70_v12  ;;  %v84_v23 = vld [vmem:[%s3236_s1 + $0x1d0] sm:$0xff]  ;;  %v67_v25 = vld [vmem:[%s3236_s1 + $0x148] sm:$0xff]  ;;  %v34_v28 = vld [vmem:[%s3236_s1 + $0x40] sm:$0xff] }
   0xa   :  { %646 = vmatpush.msra.mxu1 %v54_v14  ;;  %627 = vmatpush.msra.mxu0 %v37_v16  ;;  %v51_v26 = vld [vmem:[%s3236_s1 + $0xc8] sm:$0xff]  ;;  %v66_v29 = vld [vmem:[%s3236_s1 + $0x140] sm:$0xff]  ;;  %v33_v32 = vld [vmem:[%s3236_s1 + $0x38] sm:$0xff] }
   0xb   :  { %686 = vmatpush.msra.mxu3 %v86_v15  ;;  %667 = vmatpush.msra.mxu2 %v69_v17  ;;  %v83_v27 = vld [vmem:[%s3236_s1 + $0x1c8] sm:$0xff]  ;;  %v50_v30 = vld [vmem:[%s3236_s1 + $0xc0] sm:$0xff]  ;;  %v65_v33 = vld [vmem:[%s3236_s1 + $0x138] sm:$0xff] }
   0xc   :  { %647 = vmatpush.msra.mxu1 %v53_v18  ;;  %628 = vmatpush.msra.mxu0 %v36_v20  ;;  %v82_v31 = vld [vmem:[%s3236_s1 + $0x1c0] sm:$0xff]  ;;  %v49_v34 = vld [vmem:[%s3236_s1 + $0xb8] sm:$0xff]  ;;  %v32_v36 = vld [vmem:[%s3236_s1 + $0x30] sm:$0xff] }
   0xd   :  { %687 = vmatpush.msra.mxu3 %v85_v19  ;;  %668 = vmatpush.msra.mxu2 %v68_v21  ;;  %v81_v35 = vld [vmem:[%s3236_s1 + $0x1b8] sm:$0xff]  ;;  %v64_v37 = vld [vmem:[%s3236_s1 + $0x130] sm:$0xff]  ;;  %v31_v40 = vld [vmem:[%s3236_s1 + $0x28] sm:$0xff] }
   0xe   :  { %648 = vmatpush.msra.mxu1 %v52_v22  ;;  %629 = vmatpush.msra.mxu0 %v35_v24  ;;  %v48_v38 = vld [vmem:[%s3236_s1 + $0xb0] sm:$0xff]  ;;  %v63_v41 = vld [vmem:[%s3236_s1 + $0x128] sm:$0xff]  ;;  %v30_v44 = vld [vmem:[%s3236_s1 + $0x20] sm:$0xff] }
   0xf   :  { %688 = vmatpush.msra.mxu3 %v84_v23  ;;  %669 = vmatpush.msra.mxu2 %v67_v25  ;;  %v80_v39 = vld [vmem:[%s3236_s1 + $0x1b0] sm:$0xff]  ;;  %v47_v42 = vld [vmem:[%s3236_s1 + $0xa8] sm:$0xff]  ;;  %v62_v45 = vld [vmem:[%s3236_s1 + $0x120] sm:$0xff] }
  0x10   :  { %649 = vmatpush.msra.mxu1 %v51_v26  ;;  %630 = vmatpush.msra.mxu0 %v34_v28  ;;  %v79_v43 = vld [vmem:[%s3236_s1 + $0x1a8] sm:$0xff]  ;;  %v46_v46 = vld [vmem:[%s3236_s1 + $0xa0] sm:$0xff]  ;;  %v29_v48 = vld [vmem:[%s3236_s1 + $0x18] sm:$0xff] }
  0x11   :  { %689 = vmatpush.msra.mxu3 %v83_v27  ;;  %670 = vmatpush.msra.mxu2 %v66_v29  ;;  %v78_v47 = vld [vmem:[%s3236_s1 + $0x1a0] sm:$0xff]  ;;  %v61_v49 = vld [vmem:[%s3236_s1 + $0x118] sm:$0xff]  ;;  %v28_v52 = vld [vmem:[%s3236_s1 + $0x10] sm:$0xff] }
  0x12   :  { %650 = vmatpush.msra.mxu1 %v50_v30  ;;  %631 = vmatpush.msra.mxu0 %v33_v32  ;;  %v45_v50 = vld [vmem:[%s3236_s1 + $0x98] sm:$0xff]  ;;  %v60_v53 = vld [vmem:[%s3236_s1 + $0x110] sm:$0xff]  ;;  %v27_v56 = vld [vmem:[%s3236_s1 + $0x8] sm:$0xff] }
  0x13   :  { %690 = vmatpush.msra.mxu3 %v82_v31  ;;  %671 = vmatpush.msra.mxu2 %v65_v33  ;;  %v77_v51 = vld [vmem:[%s3236_s1 + $0x198] sm:$0xff]  ;;  %v44_v54 = vld [vmem:[%s3236_s1 + $0x90] sm:$0xff]  ;;  %v59_v57 = vld [vmem:[%s3236_s1 + $0x108] sm:$0xff] }
  0x14   :  { %651 = vmatpush.msra.mxu1 %v49_v34  ;;  %632 = vmatpush.msra.mxu0 %v32_v36  ;;  %v76_v55 = vld [vmem:[%s3236_s1 + $0x190] sm:$0xff]  ;;  %v43_v58 = vld [vmem:[%s3236_s1 + $0x88] sm:$0xff]  ;;  %v26_v60 = vld [vmem:[%s3236_s1] sm:$0xff] }
  0x15   :  { %691 = vmatpush.msra.mxu3 %v81_v35  ;;  %672 = vmatpush.msra.mxu2 %v64_v37  ;;  %v75_v59 = vld [vmem:[%s3236_s1 + $0x188] sm:$0xff]  ;;  %v58_v61 = vld [vmem:[%s3236_s1 + $0x100] sm:$0xff]  ;;  %v105_v62 = vld [vmem:[%s3236_s1 + $0x278] sm:$0xff] }
  0x16   :  { %652 = vmatpush.msra.mxu1 %v48_v38  ;;  %633 = vmatpush.msra.mxu0 %v31_v40  ;;  %v137_v63 = vld [vmem:[%s3236_s1 + $0x378] sm:$0xff]  ;;  %v42_v0 = vld [vmem:[%s3236_s1 + $0x80] sm:$0xff]  ;;  %v104_v2 = vld [vmem:[%s3236_s1 + $0x270] sm:$0xff] }
  0x17   :  { %692 = vmatpush.msra.mxu3 %v80_v39  ;;  %673 = vmatpush.msra.mxu2 %v63_v41  ;;  %v74_v1 = vld [vmem:[%s3236_s1 + $0x180] sm:$0xff]  ;;  %v121_v3 = vld [vmem:[%s3236_s1 + $0x2f8] sm:$0xff]  ;;  %v136_v4 = vld [vmem:[%s3236_s1 + $0x370] sm:$0xff] }
  0x18   :  { %653 = vmatpush.msra.mxu1 %v47_v42  ;;  %634 = vmatpush.msra.mxu0 %v30_v44  ;;  %v153_v5 = vld [vmem:[%s3236_s1 + $0x3f8] sm:$0xff]  ;;  %v103_v6 = vld [vmem:[%s3236_s1 + $0x268] sm:$0xff]  ;;  %v120_v7 = vld [vmem:[%s3236_s1 + $0x2f0] sm:$0xff] }
  0x19   :  { %693 = vmatpush.msra.mxu3 %v79_v43  ;;  %674 = vmatpush.msra.mxu2 %v62_v45  ;;  %v135_v8 = vld [vmem:[%s3236_s1 + $0x368] sm:$0xff]  ;;  %v152_v9 = vld [vmem:[%s3236_s1 + $0x3f0] sm:$0xff]  ;;  %v102_v10 = vld [vmem:[%s3236_s1 + $0x260] sm:$0xff] }
  0x1a   :  { %654 = vmatpush.msra.mxu1 %v46_v46  ;;  %635 = vmatpush.msra.mxu0 %v29_v48  ;;  %v119_v11 = vld [vmem:[%s3236_s1 + $0x2e8] sm:$0xff]  ;;  %v134_v12 = vld [vmem:[%s3236_s1 + $0x360] sm:$0xff]  ;;  %v101_v14 = vld [vmem:[%s3236_s1 + $0x258] sm:$0xff] }
  0x1b   :  { %694 = vmatpush.msra.mxu3 %v78_v47  ;;  %675 = vmatpush.msra.mxu2 %v61_v49  ;;  %v151_v13 = vld [vmem:[%s3236_s1 + $0x3e8] sm:$0xff]  ;;  %v118_v15 = vld [vmem:[%s3236_s1 + $0x2e0] sm:$0xff]  ;;  %v133_v16 = vld [vmem:[%s3236_s1 + $0x358] sm:$0xff] }
  0x1c   :  { %655 = vmatpush.msra.mxu1 %v45_v50  ;;  %636 = vmatpush.msra.mxu0 %v28_v52  ;;  %v150_v17 = vld [vmem:[%s3236_s1 + $0x3e0] sm:$0xff]  ;;  %v100_v18 = vld [vmem:[%s3236_s1 + $0x250] sm:$0xff]  ;;  %v117_v19 = vld [vmem:[%s3236_s1 + $0x2d8] sm:$0xff] }
  0x1d   :  { %695 = vmatpush.msra.mxu3 %v77_v51  ;;  %676 = vmatpush.msra.mxu2 %v60_v53  ;;  %v132_v20 = vld [vmem:[%s3236_s1 + $0x350] sm:$0xff]  ;;  %v149_v21 = vld [vmem:[%s3236_s1 + $0x3d8] sm:$0xff]  ;;  %v99_v22 = vld [vmem:[%s3236_s1 + $0x248] sm:$0xff] }
  0x1e   :  { %656 = vmatpush.msra.mxu1 %v44_v54  ;;  %637 = vmatpush.msra.mxu0 %v27_v56  ;;  %v116_v23 = vld [vmem:[%s3236_s1 + $0x2d0] sm:$0xff]  ;;  %v131_v24 = vld [vmem:[%s3236_s1 + $0x348] sm:$0xff]  ;;  %v18_v26 = vld [vmem:[%s3235_s0] sm:$0xff] }
  0x1f   :  { %696 = vmatpush.msra.mxu3 %v76_v55  ;;  %677 = vmatpush.msra.mxu2 %v59_v57  ;;  %v148_v25 = vld [vmem:[%s3236_s1 + $0x3d0] sm:$0xff]  ;;  %v98_v27 = vld [vmem:[%s3236_s1 + $0x240] sm:$0xff]  ;;  %v115_v28 = vld [vmem:[%s3236_s1 + $0x2c8] sm:$0xff]  ;;  %550 = vst [vmem:[#allocation1] ss:$4 sm:$0xff] %v18_v26 }
  0x20   :  { %657 = vmatpush.msra.mxu1 %v43_v58  ;;  %638 = vmatpush.msra.mxu0 %v26_v60  ;;  %v130_v29 = vld [vmem:[%s3236_s1 + $0x340] sm:$0xff]  ;;  %v147_v30 = vld [vmem:[%s3236_s1 + $0x3c8] sm:$0xff]  ;;  %v97_v31 = vld [vmem:[%s3236_s1 + $0x238] sm:$0xff] }
  0x21   :  { %697 = vmatpush.msra.mxu3 %v75_v59  ;;  %678 = vmatpush.msra.mxu2 %v58_v61  ;;  %v114_v32 = vld [vmem:[%s3236_s1 + $0x2c0] sm:$0xff]  ;;  %v129_v33 = vld [vmem:[%s3236_s1 + $0x338] sm:$0xff]  ;;  %v96_v35 = vld [vmem:[%s3236_s1 + $0x230] sm:$0xff] }
  0x22   :  { %703 = vmatpush.msrb.mxu0 %v105_v62  ;;  %658 = vmatpush.msra.mxu1 %v42_v0  ;;  %v146_v34 = vld [vmem:[%s3236_s1 + $0x3c0] sm:$0xff]  ;;  %v113_v36 = vld [vmem:[%s3236_s1 + $0x2b8] sm:$0xff]  ;;  %v128_v37 = vld [vmem:[%s3236_s1 + $0x330] sm:$0xff] }
  0x23   :  { %743 = vmatpush.msrb.mxu2 %v137_v63  ;;  %698 = vmatpush.msra.mxu3 %v74_v1  ;;  %v145_v38 = vld [vmem:[%s3236_s1 + $0x3b8] sm:$0xff]  ;;  %v95_v39 = vld [vmem:[%s3236_s1 + $0x228] sm:$0xff]  ;;  %v112_v40 = vld [vmem:[%s3236_s1 + $0x2b0] sm:$0xff] }
  0x24   :  { %704 = vmatpush.msrb.mxu0 %v104_v2  ;;  %723 = vmatpush.msrb.mxu1 %v121_v3  ;;  %v127_v41 = vld [vmem:[%s3236_s1 + $0x328] sm:$0xff]  ;;  %v144_v42 = vld [vmem:[%s3236_s1 + $0x3b0] sm:$0xff]  ;;  %v94_v44 = vld [vmem:[%s3236_s1 + $0x220] sm:$0xff] }
  0x25   :  { %744 = vmatpush.msrb.mxu2 %v136_v4  ;;  %763 = vmatpush.msrb.mxu3 %v153_v5  ;;  %v19_v43 = vld [vmem:[%s3235_s0 + $0x8] sm:$0xff]  ;;  %v20_v46 = vld [vmem:[%s3235_s0 + $0x10] sm:$0xff]  ;;  %v126_v47 = vld [vmem:[%s3236_s1 + $0x320] sm:$0xff] }
  0x26   :  { %705 = vmatpush.msrb.mxu0 %v103_v6  ;;  %724 = vmatpush.msrb.mxu1 %v120_v7  ;;  %v111_v45 = vld [vmem:[%s3236_s1 + $0x2a8] sm:$0xff]  ;;  %552 = vst [vmem:[#allocation1 + $0x20] ss:$4 sm:$0xff] %v19_v43  ;;  %v553_v48 = vld.sshfl [vmem:[#allocation1] sm:$0xff pattern:$0x73625140] }
  0x27   :  { %745 = vmatpush.msrb.mxu2 %v135_v8  ;;  %764 = vmatpush.msrb.mxu3 %v152_v9  ;;  %v555_v49 = vld.sshfl [vmem:[#allocation1 + $0x10] sm:$0xff pattern:$0x73625140]  ;;  %v1885_v50 = vld.sshfl [vmem:[#allocation1 + $0x8] sm:$0xff pattern:$0x73625140] }
  0x28   :  { %706 = vmatpush.msrb.mxu0 %v102_v10  ;;  %725 = vmatpush.msrb.mxu1 %v119_v11  ;;  %v1887_v51 = vld.sshfl [vmem:[#allocation1 + $0x18] sm:$0xff pattern:$0x73625140]  ;;  %v143_v52 = vld [vmem:[%s3236_s1 + $0x3a8] sm:$0xff]  ;;  %v110_v54 = vld [vmem:[%s3236_s1 + $0x2a0] sm:$0xff] }
  0x29   :  { %746 = vmatpush.msrb.mxu2 %v134_v12  ;;  %765 = vmatpush.msrb.mxu3 %v151_v13  ;;  %v93_v53 = vld [vmem:[%s3236_s1 + $0x218] sm:$0xff]  ;;  %561 = vst [vmem:[#allocation1] ss:$4 sm:$0xff] %v20_v46  ;;  %v142_v56 = vld [vmem:[%s3236_s1 + $0x3a0] sm:$0xff]  ;;  %v92_v57 = vld [vmem:[%s3236_s1 + $0x210] sm:$0xff] }
  0x2a   :  { %707 = vmatpush.msrb.mxu0 %v101_v14  ;;  %726 = vmatpush.msrb.mxu1 %v118_v15  ;;  %v125_v55 = vld [vmem:[%s3236_s1 + $0x318] sm:$0xff]  ;;  %v124_v59 = vld [vmem:[%s3236_s1 + $0x310] sm:$0xff]  ;;  %v91_v61 = vld [vmem:[%s3236_s1 + $0x208] sm:$0xff] }
  0x2b   :  { %747 = vmatpush.msrb.mxu2 %v133_v16  ;;  %766 = vmatpush.msrb.mxu3 %v150_v17  ;;  %v109_v58 = vld [vmem:[%s3236_s1 + $0x298] sm:$0xff]  ;;  %v108_v62 = vld [vmem:[%s3236_s1 + $0x290] sm:$0xff]  ;;  %v123_v4 = vld [vmem:[%s3236_s1 + $0x308] sm:$0xff] }
  0x2c   :  { %708 = vmatpush.msrb.mxu0 %v100_v18  ;;  %727 = vmatpush.msrb.mxu1 %v117_v19  ;;  %v141_v60 = vld [vmem:[%s3236_s1 + $0x398] sm:$0xff]  ;;  %v140_v5 = vld [vmem:[%s3236_s1 + $0x390] sm:$0xff]  ;;  %v90_v6 = vld [vmem:[%s3236_s1 + $0x200] sm:$0xff] }
  0x2d   :  { %748 = vmatpush.msrb.mxu2 %v132_v20  ;;  %767 = vmatpush.msrb.mxu3 %v149_v21  ;;  %v21_v63 = vld [vmem:[%s3235_s0 + $0x18] sm:$0xff]  ;;  %v1925_v0 = vld.sshfl [vmem:[#allocation1 + $0x30] sm:$0xff pattern:$0x73625140]  ;;  %v107_v7 = vld [vmem:[%s3236_s1 + $0x288] sm:$0xff] }
  0x2e   :  { %709 = vmatpush.msrb.mxu0 %v99_v22  ;;  %728 = vmatpush.msrb.mxu1 %v116_v23  ;;  %v1927_v1 = vld.sshfl [vmem:[#allocation1 + $0x20] sm:$0xff pattern:$0x73625140]  ;;  %v1929_v2 = vld.sshfl [vmem:[#allocation1 + $0x38] sm:$0xff pattern:$0x73625140] }
  0x2f   :  { %749 = vmatpush.msrb.mxu2 %v131_v24  ;;  %768 = vmatpush.msrb.mxu3 %v148_v25  ;;  %v1931_v3 = vld.sshfl [vmem:[#allocation1 + $0x28] sm:$0xff pattern:$0x73625140]  ;;  %v122_v8 = vld [vmem:[%s3236_s1 + $0x300] sm:$0xff]  ;;  %v169_v10 = vld [vmem:[%s3236_s1 + $0x478] sm:$0xff] }
  0x30   :  { %710 = vmatpush.msrb.mxu0 %v98_v27  ;;  %729 = vmatpush.msrb.mxu1 %v115_v28  ;;  %562 = vst [vmem:[#allocation1 + $0x20] ss:$4 sm:$0xff] %v21_v63  ;;  %v139_v9 = vld [vmem:[%s3236_s1 + $0x388] sm:$0xff]  ;;  %v201_v11 = vld [vmem:[%s3236_s1 + $0x578] sm:$0xff]  ;;  %v106_v12 = vld [vmem:[%s3236_s1 + $0x280] sm:$0xff] }
  0x31   :  { %750 = vmatpush.msrb.mxu2 %v130_v29  ;;  %769 = vmatpush.msrb.mxu3 %v147_v30  ;;  %v138_v13 = vld [vmem:[%s3236_s1 + $0x380] sm:$0xff]  ;;  %v168_v14 = vld [vmem:[%s3236_s1 + $0x470] sm:$0xff]  ;;  %v185_v15 = vld [vmem:[%s3236_s1 + $0x4f8] sm:$0xff] }
  0x32   :  { %711 = vmatpush.msrb.mxu0 %v97_v31  ;;  %730 = vmatpush.msrb.mxu1 %v114_v32  ;;  %v200_v16 = vld [vmem:[%s3236_s1 + $0x570] sm:$0xff]  ;;  %v217_v17 = vld [vmem:[%s3236_s1 + $0x5f8] sm:$0xff]  ;;  %v167_v18 = vld [vmem:[%s3236_s1 + $0x468] sm:$0xff] }
  0x33   :  { %751 = vmatpush.msrb.mxu2 %v129_v33  ;;  %770 = vmatpush.msrb.mxu3 %v146_v34  ;;  %v184_v19 = vld [vmem:[%s3236_s1 + $0x4f0] sm:$0xff]  ;;  %v199_v20 = vld [vmem:[%s3236_s1 + $0x568] sm:$0xff]  ;;  %v166_v22 = vld [vmem:[%s3236_s1 + $0x460] sm:$0xff] }
  0x34   :  { %712 = vmatpush.msrb.mxu0 %v96_v35  ;;  %731 = vmatpush.msrb.mxu1 %v113_v36  ;;  %v216_v21 = vld [vmem:[%s3236_s1 + $0x5f0] sm:$0xff]  ;;  %v183_v23 = vld [vmem:[%s3236_s1 + $0x4e8] sm:$0xff]  ;;  %v198_v24 = vld [vmem:[%s3236_s1 + $0x560] sm:$0xff] }
  0x35   :  { %752 = vmatpush.msrb.mxu2 %v128_v37  ;;  %771 = vmatpush.msrb.mxu3 %v145_v38  ;;  %v215_v25 = vld [vmem:[%s3236_s1 + $0x5e8] sm:$0xff]  ;;  %v2001_v26 = vld.sshfl [vmem:[#allocation1] sm:$0xff pattern:$0x73625140]  ;;  %v165_v29 = vld [vmem:[%s3236_s1 + $0x458] sm:$0xff] }
  0x36   :  { %713 = vmatpush.msrb.mxu0 %v95_v39  ;;  %732 = vmatpush.msrb.mxu1 %v112_v40  ;;  %v2003_v27 = vld.sshfl [vmem:[#allocation1 + $0x10] sm:$0xff pattern:$0x73625140]  ;;  %v2005_v28 = vld.sshfl [vmem:[#allocation1 + $0x8] sm:$0xff pattern:$0x73625140] }
  0x37   :  { %753 = vmatpush.msrb.mxu2 %v127_v41  ;;  %772 = vmatpush.msrb.mxu3 %v144_v42  ;;  %v22_v30 = vld [vmem:[%s3235_s0 + $0x20] sm:$0xff]  ;;  %v2013_v31 = vld.sshfl [vmem:[#allocation1 + $0x18] sm:$0xff pattern:$0x73625140] }
  0x38   :  { %714 = vmatpush.msrb.mxu0 %v94_v44  ;;  %733 = vmatpush.msrb.mxu1 %v111_v45  ;;  %v182_v32 = vld [vmem:[%s3236_s1 + $0x4e0] sm:$0xff]  ;;  %v197_v33 = vld [vmem:[%s3236_s1 + $0x558] sm:$0xff]  ;;  %571 = vst [vmem:[#allocation1] ss:$4 sm:$0xff] %v22_v30 }
  0x39   :  { %754 = vmatpush.msrb.mxu2 %v126_v47  ;;  %773 = vmatpush.msrb.mxu3 %v143_v52  ;;  %v214_v34 = vld [vmem:[%s3236_s1 + $0x5e0] sm:$0xff] }
  0x3a   :  { %715 = vmatpush.msrb.mxu0 %v93_v53  ;;  %734 = vmatpush.msrb.mxu1 %v110_v54 }
  0x3b   :  { %755 = vmatpush.msrb.mxu2 %v125_v55  ;;  %774 = vmatpush.msrb.mxu3 %v142_v56 }
  0x3c   :  { %716 = vmatpush.msrb.mxu0 %v92_v57  ;;  %735 = vmatpush.msrb.mxu1 %v109_v58 }
  0x3d   :  { %756 = vmatpush.msrb.mxu2 %v124_v59  ;;  %775 = vmatpush.msrb.mxu3 %v141_v60 }
  0x3e   :  { %717 = vmatpush.msrb.mxu0 %v91_v61  ;;  %736 = vmatpush.msrb.mxu1 %v108_v62 }
  0x3f   :  { %757 = vmatpush.msrb.mxu2 %v123_v4  ;;  %776 = vmatpush.msrb.mxu3 %v140_v5 }
  0x40   :  { %718 = vmatpush.msrb.mxu0 %v90_v6  ;;  %737 = vmatpush.msrb.mxu1 %v107_v7 }
  0x41   :  { %758 = vmatpush.msrb.mxu2 %v122_v8  ;;  %777 = vmatpush.msrb.mxu3 %v139_v9 }
  0x42   :  { %639 = vmatmul.f32.vlgmr.msra.gmra.mxu0 %v553_v48  ;;  %679 = vmatmul.f32.vlgmr.msra.gmra.mxu2 %v555_v49 }
  0x43   :  { %783 = vmatpush.msra.mxu0 %v169_v10  ;;  %823 = vmatpush.msra.mxu2 %v201_v11 }
  0x44   :  { %738 = vmatpush.msrb.mxu1 %v106_v12  ;;  %778 = vmatpush.msrb.mxu3 %v138_v13 }
  0x45   :  { %659 = vmatmul.f32.vlgmr.msra.gmra.mxu1 %v1885_v50  ;;  %699 = vmatmul.f32.vlgmr.msra.gmra.mxu3 %v1887_v51 }
  0x46   :  { %784 = vmatpush.msra.mxu0 %v168_v14  ;;  %803 = vmatpush.msra.mxu1 %v185_v15 }
  0x47   :  { %824 = vmatpush.msra.mxu2 %v200_v16  ;;  %843 = vmatpush.msra.mxu3 %v217_v17 }
  0x48   :  { %785 = vmatpush.msra.mxu0 %v167_v18  ;;  %804 = vmatpush.msra.mxu1 %v184_v19 }
  0x49   :  { %825 = vmatpush.msra.mxu2 %v199_v20  ;;  %844 = vmatpush.msra.mxu3 %v216_v21 }
  0x4a   :  { %786 = vmatpush.msra.mxu0 %v166_v22  ;;  %805 = vmatpush.msra.mxu1 %v183_v23 }
  0x4b   :  { %826 = vmatpush.msra.mxu2 %v198_v24  ;;  %845 = vmatpush.msra.mxu3 %v215_v25 }
  0x4c   :  { %9 = vsyncpa [#allocation3], 0  ;;  %759 = vmatmul.f32.vlgmr.msrb.gmra.mxu2 %v1925_v0  ;;  %787 = vmatpush.msra.mxu0 %v165_v29  ;;  %v164_v35 = vld [vmem:[%s3236_s1 + $0x450] sm:$0xff]  ;;  %v181_v36 = vld [vmem:[%s3236_s1 + $0x4d8] sm:$0xff]  ;;  %vm1280_vm0 = vcmask 261120   ;;  %vm1447_vm5 = vcmask 1041408  }
  0x4d   :  { %806 = vmatpush.msra.mxu1 %v182_v32  ;;  %827 = vmatpush.msra.mxu2 %v197_v33  ;;  %v196_v37 = vld [vmem:[%s3236_s1 + $0x550] sm:$0xff]  ;;  %v213_v38 = vld [vmem:[%s3236_s1 + $0x5d8] sm:$0xff]  ;;  %v163_v39 = vld [vmem:[%s3236_s1 + $0x448] sm:$0xff]  ;;  %s1462_s15 = sshll.u32 %s3239_s4, 4  ;;  %s1463_s15 = int_to_ptr.hbm [resolvable:$true] %s1462_s15 }
  0x4e   :  { %846 = vmatpush.msra.mxu3 %v214_v34  ;;  %719 = vmatmul.f32.vlgmr.msrb.gmra.mxu0 %v1927_v1  ;;  %v180_v40 = vld [vmem:[%s3236_s1 + $0x4d0] sm:$0xff]  ;;  %v195_v41 = vld [vmem:[%s3236_s1 + $0x548] sm:$0xff]  ;;  %v162_v43 = vld [vmem:[%s3236_s1 + $0x440] sm:$0xff] }
  0x4f   :  { %779 = vmatmul.f32.vlgmr.msrb.gmra.mxu3 %v1929_v2  ;;  %788 = vmatpush.msra.mxu0 %v164_v35  ;;  %v212_v42 = vld [vmem:[%s3236_s1 + $0x5d0] sm:$0xff]  ;;  %v179_v44 = vld [vmem:[%s3236_s1 + $0x4c8] sm:$0xff]  ;;  %v194_v45 = vld [vmem:[%s3236_s1 + $0x540] sm:$0xff] }
  0x50   :  { %807 = vmatpush.msra.mxu1 %v181_v36  ;;  %828 = vmatpush.msra.mxu2 %v196_v37  ;;  %v211_v46 = vld [vmem:[%s3236_s1 + $0x5c8] sm:$0xff]  ;;  %v161_v47 = vld [vmem:[%s3236_s1 + $0x438] sm:$0xff]  ;;  %v178_v48 = vld [vmem:[%s3236_s1 + $0x4c0] sm:$0xff] }
  0x51   :  { %847 = vmatpush.msra.mxu3 %v213_v38  ;;  %739 = vmatmul.f32.vlgmr.msrb.gmra.mxu1 %v1931_v3  ;;  %v193_v49 = vld [vmem:[%s3236_s1 + $0x538] sm:$0xff]  ;;  %v210_v50 = vld [vmem:[%s3236_s1 + $0x5c0] sm:$0xff]  ;;  %v160_v51 = vld [vmem:[%s3236_s1 + $0x430] sm:$0xff] }
  0x52   :  { %789 = vmatpush.msra.mxu0 %v163_v39  ;;  %808 = vmatpush.msra.mxu1 %v180_v40  ;;  %v177_v52 = vld [vmem:[%s3236_s1 + $0x4b8] sm:$0xff]  ;;  %v192_v53 = vld [vmem:[%s3236_s1 + $0x530] sm:$0xff]  ;;  %v159_v55 = vld [vmem:[%s3236_s1 + $0x428] sm:$0xff] }
  0x53   :  { %829 = vmatpush.msra.mxu2 %v195_v41  ;;  %848 = vmatpush.msra.mxu3 %v212_v42  ;;  %v209_v54 = vld [vmem:[%s3236_s1 + $0x5b8] sm:$0xff]  ;;  %v176_v56 = vld [vmem:[%s3236_s1 + $0x4b0] sm:$0xff]  ;;  %v191_v57 = vld [vmem:[%s3236_s1 + $0x528] sm:$0xff] }
  0x54   :  { %790 = vmatpush.msra.mxu0 %v162_v43  ;;  %809 = vmatpush.msra.mxu1 %v179_v44  ;;  %v208_v58 = vld [vmem:[%s3236_s1 + $0x5b0] sm:$0xff]  ;;  %v158_v59 = vld [vmem:[%s3236_s1 + $0x420] sm:$0xff]  ;;  %v175_v60 = vld [vmem:[%s3236_s1 + $0x4a8] sm:$0xff] }
  0x55   :  { %830 = vmatpush.msra.mxu2 %v194_v45  ;;  %849 = vmatpush.msra.mxu3 %v211_v46  ;;  %v190_v61 = vld [vmem:[%s3236_s1 + $0x520] sm:$0xff]  ;;  %v207_v62 = vld [vmem:[%s3236_s1 + $0x5a8] sm:$0xff]  ;;  %v157_v63 = vld [vmem:[%s3236_s1 + $0x418] sm:$0xff] }
  0x56   :  { %791 = vmatpush.msra.mxu0 %v161_v47  ;;  %810 = vmatpush.msra.mxu1 %v178_v48  ;;  %v174_v0 = vld [vmem:[%s3236_s1 + $0x4a0] sm:$0xff]  ;;  %v189_v1 = vld [vmem:[%s3236_s1 + $0x518] sm:$0xff]  ;;  %v156_v3 = vld [vmem:[%s3236_s1 + $0x410] sm:$0xff] }
  0x57   :  { %831 = vmatpush.msra.mxu2 %v193_v49  ;;  %850 = vmatpush.msra.mxu3 %v210_v50  ;;  %v206_v2 = vld [vmem:[%s3236_s1 + $0x5a0] sm:$0xff]  ;;  %v173_v4 = vld [vmem:[%s3236_s1 + $0x498] sm:$0xff]  ;;  %v188_v5 = vld [vmem:[%s3236_s1 + $0x510] sm:$0xff] }
  0x58   :  { %792 = vmatpush.msra.mxu0 %v160_v51  ;;  %811 = vmatpush.msra.mxu1 %v177_v52  ;;  %v205_v6 = vld [vmem:[%s3236_s1 + $0x598] sm:$0xff]  ;;  %v155_v7 = vld [vmem:[%s3236_s1 + $0x408] sm:$0xff]  ;;  %v172_v8 = vld [vmem:[%s3236_s1 + $0x490] sm:$0xff] }
  0x59   :  { %832 = vmatpush.msra.mxu2 %v192_v53  ;;  %851 = vmatpush.msra.mxu3 %v209_v54  ;;  %v187_v9 = vld [vmem:[%s3236_s1 + $0x508] sm:$0xff]  ;;  %v204_v10 = vld [vmem:[%s3236_s1 + $0x590] sm:$0xff]  ;;  %v154_v11 = vld [vmem:[%s3236_s1 + $0x400] sm:$0xff] }
  0x5a   :  { %793 = vmatpush.msra.mxu0 %v159_v55  ;;  %812 = vmatpush.msra.mxu1 %v176_v56  ;;  %v171_v12 = vld [vmem:[%s3236_s1 + $0x488] sm:$0xff]  ;;  %v186_v13 = vld [vmem:[%s3236_s1 + $0x500] sm:$0xff]  ;;  %v233_v15 = vld [vmem:[%s3236_s1 + $0x678] sm:$0xff] }
  0x5b   :  { %833 = vmatpush.msra.mxu2 %v191_v57  ;;  %852 = vmatpush.msra.mxu3 %v208_v58  ;;  %v203_v14 = vld [vmem:[%s3236_s1 + $0x588] sm:$0xff]  ;;  %v265_v16 = vld [vmem:[%s3236_s1 + $0x778] sm:$0xff]  ;;  %v170_v17 = vld [vmem:[%s3236_s1 + $0x480] sm:$0xff] }
  0x5c   :  { %794 = vmatpush.msra.mxu0 %v158_v59  ;;  %813 = vmatpush.msra.mxu1 %v175_v60  ;;  %v202_v18 = vld [vmem:[%s3236_s1 + $0x580] sm:$0xff]  ;;  %v232_v19 = vld [vmem:[%s3236_s1 + $0x670] sm:$0xff]  ;;  %v249_v20 = vld [vmem:[%s3236_s1 + $0x6f8] sm:$0xff] }
  0x5d   :  { %834 = vmatpush.msra.mxu2 %v190_v61  ;;  %853 = vmatpush.msra.mxu3 %v207_v62  ;;  %v264_v21 = vld [vmem:[%s3236_s1 + $0x770] sm:$0xff]  ;;  %v281_v22 = vld [vmem:[%s3236_s1 + $0x7f8] sm:$0xff]  ;;  %v231_v23 = vld [vmem:[%s3236_s1 + $0x668] sm:$0xff] }
  0x5e   :  { %795 = vmatpush.msra.mxu0 %v157_v63  ;;  %814 = vmatpush.msra.mxu1 %v174_v0  ;;  %v248_v24 = vld [vmem:[%s3236_s1 + $0x6f0] sm:$0xff]  ;;  %v263_v25 = vld [vmem:[%s3236_s1 + $0x768] sm:$0xff]  ;;  %v2203_v29 = vld.sshfl [vmem:[#allocation1 + $0x20] sm:$0xff pattern:$0x73625140] }
  0x5f   :  { %835 = vmatpush.msra.mxu2 %v189_v1  ;;  %854 = vmatpush.msra.mxu3 %v206_v2  ;;  %v2205_v30 = vld.sshfl [vmem:[#allocation1 + $0x30] sm:$0xff pattern:$0x73625140]  ;;  %v2207_v32 = vld.sshfl [vmem:[#allocation1 + $0x28] sm:$0xff pattern:$0x73625140] }
  0x60   :  { %796 = vmatpush.msra.mxu0 %v156_v3  ;;  %815 = vmatpush.msra.mxu1 %v173_v4  ;;  %v2215_v33 = vld.sshfl [vmem:[#allocation1 + $0x38] sm:$0xff pattern:$0x73625140]  ;;  %v262_v34 = vld [vmem:[%s3236_s1 + $0x760] sm:$0xff]  ;;  %v279_v35 = vld [vmem:[%s3236_s1 + $0x7e8] sm:$0xff] }
  0x61   :  { %836 = vmatpush.msra.mxu2 %v188_v5  ;;  %855 = vmatpush.msra.mxu3 %v205_v6  ;;  %v229_v36 = vld [vmem:[%s3236_s1 + $0x658] sm:$0xff]  ;;  %v246_v37 = vld [vmem:[%s3236_s1 + $0x6e0] sm:$0xff]  ;;  %v228_v40 = vld [vmem:[%s3236_s1 + $0x650] sm:$0xff] }
  0x62   :  { %797 = vmatpush.msra.mxu0 %v155_v7  ;;  %816 = vmatpush.msra.mxu1 %v172_v8  ;;  %v261_v38 = vld [vmem:[%s3236_s1 + $0x758] sm:$0xff]  ;;  %v278_v39 = vld [vmem:[%s3236_s1 + $0x7e0] sm:$0xff]  ;;  %v260_v42 = vld [vmem:[%s3236_s1 + $0x750] sm:$0xff] }
  0x63   :  { %837 = vmatpush.msra.mxu2 %v187_v9  ;;  %856 = vmatpush.msra.mxu3 %v204_v10  ;;  %v245_v41 = vld [vmem:[%s3236_s1 + $0x6d8] sm:$0xff]  ;;  %v227_v44 = vld [vmem:[%s3236_s1 + $0x648] sm:$0xff]  ;;  %v244_v45 = vld [vmem:[%s3236_s1 + $0x6d0] sm:$0xff] }
  0x64   :  { %798 = vmatpush.msra.mxu0 %v154_v11  ;;  %817 = vmatpush.msra.mxu1 %v171_v12  ;;  %v277_v43 = vld [vmem:[%s3236_s1 + $0x7d8] sm:$0xff]  ;;  %v259_v46 = vld [vmem:[%s3236_s1 + $0x748] sm:$0xff]  ;;  %v276_v47 = vld [vmem:[%s3236_s1 + $0x7d0] sm:$0xff] }
  0x65   :  { %838 = vmatpush.msra.mxu2 %v186_v13  ;;  %857 = vmatpush.msra.mxu3 %v203_v14  ;;  %v226_v48 = vld [vmem:[%s3236_s1 + $0x640] sm:$0xff]  ;;  %v243_v49 = vld [vmem:[%s3236_s1 + $0x6c8] sm:$0xff]  ;;  %v225_v52 = vld [vmem:[%s3236_s1 + $0x638] sm:$0xff] }
  0x66   :  { %799 = vmatmul.f32.vlgmr.msra.gmra.mxu0 %v2001_v26  ;;  %839 = vmatmul.f32.vlgmr.msra.gmra.mxu2 %v2003_v27  ;;  %v280_v26 = vld [vmem:[%s3236_s1 + $0x7f0] sm:$0xff]  ;;  %v230_v27 = vld [vmem:[%s3236_s1 + $0x660] sm:$0xff]  ;;  %v275_v51 = vld [vmem:[%s3236_s1 + $0x7c8] sm:$0xff] }
  0x67   :  { %863 = vmatpush.msrb.mxu0 %v233_v15  ;;  %903 = vmatpush.msrb.mxu2 %v265_v16  ;;  %v258_v50 = vld [vmem:[%s3236_s1 + $0x740] sm:$0xff]  ;;  %v257_v54 = vld [vmem:[%s3236_s1 + $0x738] sm:$0xff]  ;;  %v224_v56 = vld [vmem:[%s3236_s1 + $0x630] sm:$0xff] }
  0x68   :  { %818 = vmatpush.msra.mxu1 %v170_v17  ;;  %858 = vmatpush.msra.mxu3 %v202_v18  ;;  %v242_v53 = vld [vmem:[%s3236_s1 + $0x6c0] sm:$0xff]  ;;  %v241_v57 = vld [vmem:[%s3236_s1 + $0x6b8] sm:$0xff]  ;;  %v256_v58 = vld [vmem:[%s3236_s1 + $0x730] sm:$0xff] }
  0x69   :  { %819 = vmatmul.f32.vlgmr.msra.gmra.mxu1 %v2005_v28  ;;  %859 = vmatmul.f32.vlgmr.msra.gmra.mxu3 %v2013_v31  ;;  %v247_v28 = vld [vmem:[%s3236_s1 + $0x6e8] sm:$0xff]  ;;  %v274_v55 = vld [vmem:[%s3236_s1 + $0x7c0] sm:$0xff]  ;;  %v273_v59 = vld [vmem:[%s3236_s1 + $0x7b8] sm:$0xff] }
  0x6a   :  { %864 = vmatpush.msrb.mxu0 %v232_v19  ;;  %883 = vmatpush.msrb.mxu1 %v249_v20  ;;  %v23_v31 = vld [vmem:[%s3235_s0 + $0x28] sm:$0xff]  ;;  %v240_v61 = vld [vmem:[%s3236_s1 + $0x6b0] sm:$0xff]  ;;  %v222_v0 = vld [vmem:[%s3236_s1 + $0x620] sm:$0xff] }
  0x6b   :  { %904 = vmatpush.msrb.mxu2 %v264_v21  ;;  %923 = vmatpush.msrb.mxu3 %v281_v22  ;;  %572 = vst [vmem:[#allocation1 + $0x20] ss:$4 sm:$0xff] %v23_v31  ;;  %v223_v60 = vld [vmem:[%s3236_s1 + $0x628] sm:$0xff]  ;;  %v272_v63 = vld [vmem:[%s3236_s1 + $0x7b0] sm:$0xff]  ;;  %v254_v2 = vld [vmem:[%s3236_s1 + $0x720] sm:$0xff] }
  0x6c   :  { %865 = vmatpush.msrb.mxu0 %v231_v23  ;;  %884 = vmatpush.msrb.mxu1 %v248_v24  ;;  %v255_v62 = vld [vmem:[%s3236_s1 + $0x728] sm:$0xff]  ;;  %v221_v4 = vld [vmem:[%s3236_s1 + $0x618] sm:$0xff]  ;;  %v238_v5 = vld [vmem:[%s3236_s1 + $0x6a0] sm:$0xff] }
  0x6d   :  { %905 = vmatpush.msrb.mxu2 %v263_v25  ;;  %924 = vmatpush.msrb.mxu3 %v280_v26  ;;  %v239_v1 = vld [vmem:[%s3236_s1 + $0x6a8] sm:$0xff]  ;;  %v253_v6 = vld [vmem:[%s3236_s1 + $0x718] sm:$0xff]  ;;  %v270_v7 = vld [vmem:[%s3236_s1 + $0x7a0] sm:$0xff] }
  0x6e   :  { %866 = vmatpush.msrb.mxu0 %v230_v27  ;;  %885 = vmatpush.msrb.mxu1 %v247_v28  ;;  %v271_v3 = vld [vmem:[%s3236_s1 + $0x7a8] sm:$0xff]  ;;  %v220_v8 = vld [vmem:[%s3236_s1 + $0x610] sm:$0xff]  ;;  %v237_v9 = vld [vmem:[%s3236_s1 + $0x698] sm:$0xff] }
  0x6f   :  { %906 = vmatpush.msrb.mxu2 %v262_v34  ;;  %925 = vmatpush.msrb.mxu3 %v279_v35  ;;  %v252_v10 = vld [vmem:[%s3236_s1 + $0x710] sm:$0xff]  ;;  %v269_v11 = vld [vmem:[%s3236_s1 + $0x798] sm:$0xff]  ;;  %v219_v12 = vld [vmem:[%s3236_s1 + $0x608] sm:$0xff] }
  0x70   :  { %867 = vmatpush.msrb.mxu0 %v229_v36  ;;  %886 = vmatpush.msrb.mxu1 %v246_v37  ;;  %v236_v13 = vld [vmem:[%s3236_s1 + $0x690] sm:$0xff]  ;;  %v251_v14 = vld [vmem:[%s3236_s1 + $0x708] sm:$0xff]  ;;  %v218_v16 = vld [vmem:[%s3236_s1 + $0x600] sm:$0xff] }
  0x71   :  { %907 = vmatpush.msrb.mxu2 %v261_v38  ;;  %926 = vmatpush.msrb.mxu3 %v278_v39  ;;  %v268_v15 = vld [vmem:[%s3236_s1 + $0x790] sm:$0xff]  ;;  %v235_v17 = vld [vmem:[%s3236_s1 + $0x688] sm:$0xff]  ;;  %v250_v18 = vld [vmem:[%s3236_s1 + $0x700] sm:$0xff] }
  0x72   :  { %868 = vmatpush.msrb.mxu0 %v228_v40  ;;  %887 = vmatpush.msrb.mxu1 %v245_v41  ;;  %v267_v19 = vld [vmem:[%s3236_s1 + $0x788] sm:$0xff]  ;;  %v297_v20 = vld [vmem:[%s3236_s1 + $0x878] sm:$0xff]  ;;  %v234_v22 = vld [vmem:[%s3236_s1 + $0x680] sm:$0xff] }
  0x73   :  { %908 = vmatpush.msrb.mxu2 %v260_v42  ;;  %927 = vmatpush.msrb.mxu3 %v277_v43  ;;  %v329_v21 = vld [vmem:[%s3236_s1 + $0x978] sm:$0xff]  ;;  %v266_v23 = vld [vmem:[%s3236_s1 + $0x780] sm:$0xff]  ;;  %v296_v24 = vld [vmem:[%s3236_s1 + $0x870] sm:$0xff] }
  0x74   :  { %869 = vmatpush.msrb.mxu0 %v227_v44  ;;  %888 = vmatpush.msrb.mxu1 %v244_v45  ;;  %v313_v25 = vld [vmem:[%s3236_s1 + $0x8f8] sm:$0xff]  ;;  %v328_v26 = vld [vmem:[%s3236_s1 + $0x970] sm:$0xff]  ;;  %v327_v28 = vld [vmem:[%s3236_s1 + $0x968] sm:$0xff] }
  0x75   :  { %909 = vmatpush.msrb.mxu2 %v259_v46  ;;  %928 = vmatpush.msrb.mxu3 %v276_v47  ;;  %v345_v27 = vld [vmem:[%s3236_s1 + $0x9f8] sm:$0xff]  ;;  %v294_v31 = vld [vmem:[%s3236_s1 + $0x860] sm:$0xff]  ;;  %v343_v35 = vld [vmem:[%s3236_s1 + $0x9e8] sm:$0xff] }
  0x76   :  { %870 = vmatpush.msrb.mxu0 %v226_v48  ;;  %889 = vmatpush.msrb.mxu1 %v243_v49  ;;  %v326_v34 = vld [vmem:[%s3236_s1 + $0x960] sm:$0xff]  ;;  %v293_v36 = vld [vmem:[%s3236_s1 + $0x858] sm:$0xff]  ;;  %v292_v40 = vld [vmem:[%s3236_s1 + $0x850] sm:$0xff] }
  0x77   :  { %910 = vmatpush.msrb.mxu2 %v258_v50  ;;  %929 = vmatpush.msrb.mxu3 %v275_v51  ;;  %v310_v37 = vld [vmem:[%s3236_s1 + $0x8e0] sm:$0xff]  ;;  %v325_v38 = vld [vmem:[%s3236_s1 + $0x958] sm:$0xff]  ;;  %v324_v42 = vld [vmem:[%s3236_s1 + $0x950] sm:$0xff] }
  0x78   :  { %871 = vmatpush.msrb.mxu0 %v225_v52  ;;  %890 = vmatpush.msrb.mxu1 %v242_v53  ;;  %v342_v39 = vld [vmem:[%s3236_s1 + $0x9e0] sm:$0xff]  ;;  %v309_v41 = vld [vmem:[%s3236_s1 + $0x8d8] sm:$0xff]  ;;  %v291_v44 = vld [vmem:[%s3236_s1 + $0x848] sm:$0xff] }
  0x79   :  { %911 = vmatpush.msrb.mxu2 %v257_v54  ;;  %930 = vmatpush.msrb.mxu3 %v274_v55  ;;  %v341_v43 = vld [vmem:[%s3236_s1 + $0x9d8] sm:$0xff]  ;;  %v308_v45 = vld [vmem:[%s3236_s1 + $0x8d0] sm:$0xff]  ;;  %v323_v46 = vld [vmem:[%s3236_s1 + $0x948] sm:$0xff] }
  0x7a   :  { %872 = vmatpush.msrb.mxu0 %v224_v56  ;;  %891 = vmatpush.msrb.mxu1 %v241_v57  ;;  %v340_v47 = vld [vmem:[%s3236_s1 + $0x9d0] sm:$0xff]  ;;  %v290_v48 = vld [vmem:[%s3236_s1 + $0x840] sm:$0xff]  ;;  %v307_v49 = vld [vmem:[%s3236_s1 + $0x8c8] sm:$0xff] }
  0x7b   :  { %912 = vmatpush.msrb.mxu2 %v256_v58  ;;  %931 = vmatpush.msrb.mxu3 %v273_v59  ;;  %v322_v50 = vld [vmem:[%s3236_s1 + $0x940] sm:$0xff]  ;;  %v339_v51 = vld [vmem:[%s3236_s1 + $0x9c8] sm:$0xff]  ;;  %v289_v52 = vld [vmem:[%s3236_s1 + $0x838] sm:$0xff] }
  0x7c   :  { %873 = vmatpush.msrb.mxu0 %v223_v60  ;;  %892 = vmatpush.msrb.mxu1 %v240_v61  ;;  %v306_v53 = vld [vmem:[%s3236_s1 + $0x8c0] sm:$0xff]  ;;  %v321_v54 = vld [vmem:[%s3236_s1 + $0x938] sm:$0xff]  ;;  %v288_v56 = vld [vmem:[%s3236_s1 + $0x830] sm:$0xff] }
  0x7d   :  { %913 = vmatpush.msrb.mxu2 %v255_v62  ;;  %932 = vmatpush.msrb.mxu3 %v272_v63  ;;  %v338_v55 = vld [vmem:[%s3236_s1 + $0x9c0] sm:$0xff]  ;;  %v305_v57 = vld [vmem:[%s3236_s1 + $0x8b8] sm:$0xff]  ;;  %v320_v58 = vld [vmem:[%s3236_s1 + $0x930] sm:$0xff] }
  0x7e   :  { %874 = vmatpush.msrb.mxu0 %v222_v0  ;;  %893 = vmatpush.msrb.mxu1 %v239_v1  ;;  %v337_v59 = vld [vmem:[%s3236_s1 + $0x9b8] sm:$0xff]  ;;  %v287_v60 = vld [vmem:[%s3236_s1 + $0x828] sm:$0xff]  ;;  %v304_v61 = vld [vmem:[%s3236_s1 + $0x8b0] sm:$0xff] }
  0x7f   :  { %914 = vmatpush.msrb.mxu2 %v254_v2  ;;  %933 = vmatpush.msrb.mxu3 %v271_v3  ;;  %v319_v62 = vld [vmem:[%s3236_s1 + $0x928] sm:$0xff]  ;;  %v336_v63 = vld [vmem:[%s3236_s1 + $0x9b0] sm:$0xff]  ;;  %v286_v0 = vld [vmem:[%s3236_s1 + $0x820] sm:$0xff] }
  0x80   :  { %875 = vmatpush.msrb.mxu0 %v221_v4  ;;  %894 = vmatpush.msrb.mxu1 %v238_v5  ;;  %v303_v1 = vld [vmem:[%s3236_s1 + $0x8a8] sm:$0xff]  ;;  %v318_v2 = vld [vmem:[%s3236_s1 + $0x920] sm:$0xff]  ;;  %v285_v4 = vld [vmem:[%s3236_s1 + $0x818] sm:$0xff] }
  0x81   :  { %915 = vmatpush.msrb.mxu2 %v253_v6  ;;  %934 = vmatpush.msrb.mxu3 %v270_v7  ;;  %v335_v3 = vld [vmem:[%s3236_s1 + $0x9a8] sm:$0xff]  ;;  %v302_v5 = vld [vmem:[%s3236_s1 + $0x8a0] sm:$0xff]  ;;  %v317_v6 = vld [vmem:[%s3236_s1 + $0x918] sm:$0xff] }
  0x82   :  { %876 = vmatpush.msrb.mxu0 %v220_v8  ;;  %895 = vmatpush.msrb.mxu1 %v237_v9  ;;  %v334_v7 = vld [vmem:[%s3236_s1 + $0x9a0] sm:$0xff]  ;;  %v284_v8 = vld [vmem:[%s3236_s1 + $0x810] sm:$0xff]  ;;  %v301_v9 = vld [vmem:[%s3236_s1 + $0x898] sm:$0xff] }
  0x83   :  { %916 = vmatpush.msrb.mxu2 %v252_v10  ;;  %935 = vmatpush.msrb.mxu3 %v269_v11  ;;  %v316_v10 = vld [vmem:[%s3236_s1 + $0x910] sm:$0xff]  ;;  %v333_v11 = vld [vmem:[%s3236_s1 + $0x998] sm:$0xff] }
  0x84   :  { %877 = vmatpush.msrb.mxu0 %v219_v12  ;;  %896 = vmatpush.msrb.mxu1 %v236_v13  ;;  %v283_v12 = vld [vmem:[%s3236_s1 + $0x808] sm:$0xff]  ;;  %v300_v13 = vld [vmem:[%s3236_s1 + $0x890] sm:$0xff] }
  0x85   :  { %917 = vmatpush.msrb.mxu2 %v251_v14  ;;  %936 = vmatpush.msrb.mxu3 %v268_v15  ;;  %v315_v14 = vld [vmem:[%s3236_s1 + $0x908] sm:$0xff]  ;;  %v332_v15 = vld [vmem:[%s3236_s1 + $0x990] sm:$0xff] }
  0x86   :  { %878 = vmatpush.msrb.mxu0 %v218_v16  ;;  %897 = vmatpush.msrb.mxu1 %v235_v17  ;;  %v282_v16 = vld [vmem:[%s3236_s1 + $0x800] sm:$0xff]  ;;  %v299_v17 = vld [vmem:[%s3236_s1 + $0x888] sm:$0xff] }
  0x87   :  { %918 = vmatpush.msrb.mxu2 %v250_v18  ;;  %937 = vmatpush.msrb.mxu3 %v267_v19  ;;  %v314_v18 = vld [vmem:[%s3236_s1 + $0x900] sm:$0xff]  ;;  %v331_v19 = vld [vmem:[%s3236_s1 + $0x988] sm:$0xff] }
  0x88   :  { %879 = vmatmul.f32.vlgmr.msrb.gmra.mxu0 %v2203_v29  ;;  %919 = vmatmul.f32.vlgmr.msrb.gmra.mxu2 %v2205_v30  ;;  %v295_v29 = vld [vmem:[%s3236_s1 + $0x868] sm:$0xff]  ;;  %v312_v30 = vld [vmem:[%s3236_s1 + $0x8f0] sm:$0xff] }
  0x89   :  { %943 = vmatpush.msra.mxu0 %v297_v20  ;;  %983 = vmatpush.msra.mxu2 %v329_v21  ;;  %v573_v20 = vld.sshfl [vmem:[#allocation1] sm:$0xff pattern:$0x73625140]  ;;  %v575_v21 = vld.sshfl [vmem:[#allocation1 + $0x10] sm:$0xff pattern:$0x73625140] }
  0x8a   :  { %898 = vmatpush.msrb.mxu1 %v234_v22  ;;  %938 = vmatpush.msrb.mxu3 %v266_v23  ;;  %v361_v22 = vld [vmem:[%s3236_s1 + $0xa78] sm:$0xff] }
  0x8b   :  { %899 = vmatmul.f32.vlgmr.msrb.gmra.mxu1 %v2207_v32  ;;  %939 = vmatmul.f32.vlgmr.msrb.gmra.mxu3 %v2215_v33  ;;  %v344_v32 = vld [vmem:[%s3236_s1 + $0x9f0] sm:$0xff]  ;;  %v311_v33 = vld [vmem:[%s3236_s1 + $0x8e8] sm:$0xff]  ;;  %v393_v23 = vld [vmem:[%s3236_s1 + $0xb78] sm:$0xff] }
  0x8c   :  { %944 = vmatpush.msra.mxu0 %v296_v24  ;;  %963 = vmatpush.msra.mxu1 %v313_v25  ;;  %v298_v24 = vld [vmem:[%s3236_s1 + $0x880] sm:$0xff] }
  0x8d   :  { %984 = vmatpush.msra.mxu2 %v328_v26  ;;  %1003 = vmatpush.msra.mxu3 %v345_v27  ;;  %v330_v25 = vld [vmem:[%s3236_s1 + $0x980] sm:$0xff]  ;;  %v574_v26 = vld.sshfl [vmem:[#allocation1 + $0x8] sm:$0xff pattern:$0x73625140] }
  0x8e   :  { %945 = vmatpush.msra.mxu0 %v295_v29  ;;  %964 = vmatpush.msra.mxu1 %v312_v30  ;;  %v576_v27 = vld.sshfl [vmem:[#allocation1 + $0x18] sm:$0xff pattern:$0x73625140]  ;;  %v360_v29 = vld [vmem:[%s3236_s1 + $0xa70] sm:$0xff] }
  0x8f   :  { %985 = vmatpush.msra.mxu2 %v327_v28  ;;  %1004 = vmatpush.msra.mxu3 %v344_v32  ;;  %v377_v30 = vld [vmem:[%s3236_s1 + $0xaf8] sm:$0xff]  ;;  %v392_v28 = vld [vmem:[%s3236_s1 + $0xb70] sm:$0xff] }
  0x90   :  { %946 = vmatpush.msra.mxu0 %v294_v31  ;;  %965 = vmatpush.msra.mxu1 %v311_v33  ;;  %v409_v32 = vld [vmem:[%s3236_s1 + $0xbf8] sm:$0xff]  ;;  %v359_v31 = vld [vmem:[%s3236_s1 + $0xa68] sm:$0xff]  ;;  %v376_v33 = vld [vmem:[%s3236_s1 + $0xaf0] sm:$0xff] }
  0x91   :  { %986 = vmatpush.msra.mxu2 %v326_v34  ;;  %1005 = vmatpush.msra.mxu3 %v343_v35  ;;  %v391_v34 = vld [vmem:[%s3236_s1 + $0xb68] sm:$0xff]  ;;  %v408_v35 = vld [vmem:[%s3236_s1 + $0xbf0] sm:$0xff] }
  0x92   :  { %947 = vmatpush.msra.mxu0 %v293_v36  ;;  %966 = vmatpush.msra.mxu1 %v310_v37  ;;  %v358_v36 = vld [vmem:[%s3236_s1 + $0xa60] sm:$0xff]  ;;  %v375_v37 = vld [vmem:[%s3236_s1 + $0xae8] sm:$0xff] }
  0x93   :  { %987 = vmatpush.msra.mxu2 %v325_v38  ;;  %1006 = vmatpush.msra.mxu3 %v342_v39  ;;  %v390_v38 = vld [vmem:[%s3236_s1 + $0xb60] sm:$0xff]  ;;  %v407_v39 = vld [vmem:[%s3236_s1 + $0xbe8] sm:$0xff] }
  0x94   :  { %948 = vmatpush.msra.mxu0 %v292_v40  ;;  %967 = vmatpush.msra.mxu1 %v309_v41  ;;  %v357_v40 = vld [vmem:[%s3236_s1 + $0xa58] sm:$0xff]  ;;  %v374_v41 = vld [vmem:[%s3236_s1 + $0xae0] sm:$0xff] }
  0x95   :  { %988 = vmatpush.msra.mxu2 %v324_v42  ;;  %1007 = vmatpush.msra.mxu3 %v341_v43  ;;  %v389_v42 = vld [vmem:[%s3236_s1 + $0xb58] sm:$0xff]  ;;  %v406_v43 = vld [vmem:[%s3236_s1 + $0xbe0] sm:$0xff] }
  0x96   :  { %949 = vmatpush.msra.mxu0 %v291_v44  ;;  %968 = vmatpush.msra.mxu1 %v308_v45  ;;  %v356_v44 = vld [vmem:[%s3236_s1 + $0xa50] sm:$0xff]  ;;  %v373_v45 = vld [vmem:[%s3236_s1 + $0xad8] sm:$0xff] }
  0x97   :  { %989 = vmatpush.msra.mxu2 %v323_v46  ;;  %1008 = vmatpush.msra.mxu3 %v340_v47  ;;  %v388_v46 = vld [vmem:[%s3236_s1 + $0xb50] sm:$0xff]  ;;  %v405_v47 = vld [vmem:[%s3236_s1 + $0xbd8] sm:$0xff] }
  0x98   :  { %950 = vmatpush.msra.mxu0 %v290_v48  ;;  %969 = vmatpush.msra.mxu1 %v307_v49  ;;  %v355_v48 = vld [vmem:[%s3236_s1 + $0xa48] sm:$0xff]  ;;  %v372_v49 = vld [vmem:[%s3236_s1 + $0xad0] sm:$0xff] }
  0x99   :  { %990 = vmatpush.msra.mxu2 %v322_v50  ;;  %1009 = vmatpush.msra.mxu3 %v339_v51  ;;  %v387_v50 = vld [vmem:[%s3236_s1 + $0xb48] sm:$0xff]  ;;  %v404_v51 = vld [vmem:[%s3236_s1 + $0xbd0] sm:$0xff] }
  0x9a   :  { %951 = vmatpush.msra.mxu0 %v289_v52  ;;  %970 = vmatpush.msra.mxu1 %v306_v53  ;;  %v354_v52 = vld [vmem:[%s3236_s1 + $0xa40] sm:$0xff]  ;;  %v371_v53 = vld [vmem:[%s3236_s1 + $0xac8] sm:$0xff] }
  0x9b   :  { %991 = vmatpush.msra.mxu2 %v321_v54  ;;  %1010 = vmatpush.msra.mxu3 %v338_v55  ;;  %v386_v54 = vld [vmem:[%s3236_s1 + $0xb40] sm:$0xff]  ;;  %v403_v55 = vld [vmem:[%s3236_s1 + $0xbc8] sm:$0xff] }
  0x9c   :  { %952 = vmatpush.msra.mxu0 %v288_v56  ;;  %971 = vmatpush.msra.mxu1 %v305_v57  ;;  %v353_v56 = vld [vmem:[%s3236_s1 + $0xa38] sm:$0xff]  ;;  %v370_v57 = vld [vmem:[%s3236_s1 + $0xac0] sm:$0xff] }
  0x9d   :  { %992 = vmatpush.msra.mxu2 %v320_v58  ;;  %1011 = vmatpush.msra.mxu3 %v337_v59  ;;  %v385_v58 = vld [vmem:[%s3236_s1 + $0xb38] sm:$0xff]  ;;  %v402_v59 = vld [vmem:[%s3236_s1 + $0xbc0] sm:$0xff] }
  0x9e   :  { %953 = vmatpush.msra.mxu0 %v287_v60  ;;  %972 = vmatpush.msra.mxu1 %v304_v61  ;;  %v352_v60 = vld [vmem:[%s3236_s1 + $0xa30] sm:$0xff]  ;;  %v369_v61 = vld [vmem:[%s3236_s1 + $0xab8] sm:$0xff] }
  0x9f   :  { %993 = vmatpush.msra.mxu2 %v319_v62  ;;  %1012 = vmatpush.msra.mxu3 %v336_v63  ;;  %v384_v62 = vld [vmem:[%s3236_s1 + $0xb30] sm:$0xff]  ;;  %v401_v63 = vld [vmem:[%s3236_s1 + $0xbb8] sm:$0xff] }
  0xa0   :  { %954 = vmatpush.msra.mxu0 %v286_v0  ;;  %973 = vmatpush.msra.mxu1 %v303_v1  ;;  %v351_v0 = vld [vmem:[%s3236_s1 + $0xa28] sm:$0xff]  ;;  %v368_v1 = vld [vmem:[%s3236_s1 + $0xab0] sm:$0xff] }
  0xa1   :  { %994 = vmatpush.msra.mxu2 %v318_v2  ;;  %1013 = vmatpush.msra.mxu3 %v335_v3  ;;  %v383_v2 = vld [vmem:[%s3236_s1 + $0xb28] sm:$0xff]  ;;  %v400_v3 = vld [vmem:[%s3236_s1 + $0xbb0] sm:$0xff] }
  0xa2   :  { %955 = vmatpush.msra.mxu0 %v285_v4  ;;  %974 = vmatpush.msra.mxu1 %v302_v5  ;;  %v350_v4 = vld [vmem:[%s3236_s1 + $0xa20] sm:$0xff]  ;;  %v367_v5 = vld [vmem:[%s3236_s1 + $0xaa8] sm:$0xff] }
  0xa3   :  { %995 = vmatpush.msra.mxu2 %v317_v6  ;;  %1014 = vmatpush.msra.mxu3 %v334_v7  ;;  %v382_v6 = vld [vmem:[%s3236_s1 + $0xb20] sm:$0xff]  ;;  %v399_v7 = vld [vmem:[%s3236_s1 + $0xba8] sm:$0xff] }
  0xa4   :  { %956 = vmatpush.msra.mxu0 %v284_v8  ;;  %975 = vmatpush.msra.mxu1 %v301_v9  ;;  %v349_v8 = vld [vmem:[%s3236_s1 + $0xa18] sm:$0xff]  ;;  %v366_v9 = vld [vmem:[%s3236_s1 + $0xaa0] sm:$0xff] }
  0xa5   :  { %996 = vmatpush.msra.mxu2 %v316_v10  ;;  %1015 = vmatpush.msra.mxu3 %v333_v11  ;;  %v381_v10 = vld [vmem:[%s3236_s1 + $0xb18] sm:$0xff]  ;;  %v398_v11 = vld [vmem:[%s3236_s1 + $0xba0] sm:$0xff] }
  0xa6   :  { %957 = vmatpush.msra.mxu0 %v283_v12  ;;  %976 = vmatpush.msra.mxu1 %v300_v13  ;;  %v348_v12 = vld [vmem:[%s3236_s1 + $0xa10] sm:$0xff]  ;;  %v365_v13 = vld [vmem:[%s3236_s1 + $0xa98] sm:$0xff] }
  0xa7   :  { %997 = vmatpush.msra.mxu2 %v315_v14  ;;  %1016 = vmatpush.msra.mxu3 %v332_v15  ;;  %v380_v14 = vld [vmem:[%s3236_s1 + $0xb10] sm:$0xff]  ;;  %v397_v15 = vld [vmem:[%s3236_s1 + $0xb98] sm:$0xff] }
  0xa8   :  { %958 = vmatpush.msra.mxu0 %v282_v16  ;;  %977 = vmatpush.msra.mxu1 %v299_v17  ;;  %v347_v16 = vld [vmem:[%s3236_s1 + $0xa08] sm:$0xff]  ;;  %v364_v17 = vld [vmem:[%s3236_s1 + $0xa90] sm:$0xff] }
  0xa9   :  { %998 = vmatpush.msra.mxu2 %v314_v18  ;;  %1017 = vmatpush.msra.mxu3 %v331_v19  ;;  %v24_v18 = vld [vmem:[%s3235_s0 + $0x30] sm:$0xff]  ;;  %v379_v19 = vld [vmem:[%s3236_s1 + $0xb08] sm:$0xff] }
  0xaa   :  { %959 = vmatmul.f32.vlgmr.msra.gmra.mxu0 %v573_v20  ;;  %999 = vmatmul.f32.vlgmr.msra.gmra.mxu2 %v575_v21  ;;  %v396_v20 = vld [vmem:[%s3236_s1 + $0xb90] sm:$0xff]  ;;  %581 = vst [vmem:[#allocation1] ss:$4 sm:$0xff] %v24_v18  ;;  %v346_v21 = vld [vmem:[%s3236_s1 + $0xa00] sm:$0xff]  ;;  %v429_v18 = vld [vmem:[%s3236_s1 + $0xc98] sm:$0xff] }
  0xab   :  { %1023 = vmatpush.msrb.mxu0 %v361_v22  ;;  %1063 = vmatpush.msrb.mxu2 %v393_v23  ;;  %v363_v22 = vld [vmem:[%s3236_s1 + $0xa88] sm:$0xff]  ;;  %v378_v23 = vld [vmem:[%s3236_s1 + $0xb00] sm:$0xff] }
  0xac   :  { %978 = vmatpush.msra.mxu1 %v298_v24  ;;  %1018 = vmatpush.msra.mxu3 %v330_v25  ;;  %v395_v24 = vld [vmem:[%s3236_s1 + $0xb88] sm:$0xff]  ;;  %v577_v25 = vld.sshfl [vmem:[#allocation1 + $0x20] sm:$0xff pattern:$0x73625140] }
  0xad   :  { %979 = vmatmul.f32.vlgmr.msra.gmra.mxu1 %v574_v26  ;;  %1019 = vmatmul.f32.vlgmr.msra.gmra.mxu3 %v576_v27  ;;  %v579_v26 = vld.sshfl [vmem:[#allocation1 + $0x30] sm:$0xff pattern:$0x73625140]  ;;  %v425_v27 = vld [vmem:[%s3236_s1 + $0xc78] sm:$0xff] }
  0xae   :  { %1024 = vmatpush.msrb.mxu0 %v360_v29  ;;  %1043 = vmatpush.msrb.mxu1 %v377_v30  ;;  %v457_v29 = vld [vmem:[%s3236_s1 + $0xd78] sm:$0xff]  ;;  %v362_v30 = vld [vmem:[%s3236_s1 + $0xa80] sm:$0xff] }
  0xaf   :  { %1064 = vmatpush.msrb.mxu2 %v392_v28  ;;  %1083 = vmatpush.msrb.mxu3 %v409_v32  ;;  %v394_v28 = vld [vmem:[%s3236_s1 + $0xb80] sm:$0xff]  ;;  %v578_v32 = vld.sshfl [vmem:[#allocation1 + $0x28] sm:$0xff pattern:$0x73625140] }
  0xb0   :  { %1025 = vmatpush.msrb.mxu0 %v359_v31  ;;  %1044 = vmatpush.msrb.mxu1 %v376_v33  ;;  %v580_v31 = vld.sshfl [vmem:[#allocation1 + $0x38] sm:$0xff pattern:$0x73625140]  ;;  %v424_v33 = vld [vmem:[%s3236_s1 + $0xc70] sm:$0xff] }
  0xb1   :  { %1065 = vmatpush.msrb.mxu2 %v391_v34  ;;  %1084 = vmatpush.msrb.mxu3 %v408_v35  ;;  %v441_v34 = vld [vmem:[%s3236_s1 + $0xcf8] sm:$0xff]  ;;  %v456_v35 = vld [vmem:[%s3236_s1 + $0xd70] sm:$0xff] }
  0xb2   :  { %1026 = vmatpush.msrb.mxu0 %v358_v36  ;;  %1045 = vmatpush.msrb.mxu1 %v375_v37  ;;  %v473_v36 = vld [vmem:[%s3236_s1 + $0xdf8] sm:$0xff]  ;;  %v423_v37 = vld [vmem:[%s3236_s1 + $0xc68] sm:$0xff] }
  0xb3   :  { %1066 = vmatpush.msrb.mxu2 %v390_v38  ;;  %1085 = vmatpush.msrb.mxu3 %v407_v39  ;;  %v440_v38 = vld [vmem:[%s3236_s1 + $0xcf0] sm:$0xff]  ;;  %v455_v39 = vld [vmem:[%s3236_s1 + $0xd68] sm:$0xff] }
  0xb4   :  { %1027 = vmatpush.msrb.mxu0 %v357_v40  ;;  %1046 = vmatpush.msrb.mxu1 %v374_v41  ;;  %v472_v40 = vld [vmem:[%s3236_s1 + $0xdf0] sm:$0xff]  ;;  %v422_v41 = vld [vmem:[%s3236_s1 + $0xc60] sm:$0xff] }
  0xb5   :  { %1067 = vmatpush.msrb.mxu2 %v389_v42  ;;  %1086 = vmatpush.msrb.mxu3 %v406_v43  ;;  %v439_v42 = vld [vmem:[%s3236_s1 + $0xce8] sm:$0xff]  ;;  %v454_v43 = vld [vmem:[%s3236_s1 + $0xd60] sm:$0xff] }
  0xb6   :  { %1028 = vmatpush.msrb.mxu0 %v356_v44  ;;  %1047 = vmatpush.msrb.mxu1 %v373_v45  ;;  %v471_v44 = vld [vmem:[%s3236_s1 + $0xde8] sm:$0xff]  ;;  %v421_v45 = vld [vmem:[%s3236_s1 + $0xc58] sm:$0xff] }
  0xb7   :  { %1068 = vmatpush.msrb.mxu2 %v388_v46  ;;  %1087 = vmatpush.msrb.mxu3 %v405_v47  ;;  %v438_v46 = vld [vmem:[%s3236_s1 + $0xce0] sm:$0xff]  ;;  %v453_v47 = vld [vmem:[%s3236_s1 + $0xd58] sm:$0xff] }
  0xb8   :  { %1029 = vmatpush.msrb.mxu0 %v355_v48  ;;  %1048 = vmatpush.msrb.mxu1 %v372_v49  ;;  %v470_v48 = vld [vmem:[%s3236_s1 + $0xde0] sm:$0xff]  ;;  %v420_v49 = vld [vmem:[%s3236_s1 + $0xc50] sm:$0xff] }
  0xb9   :  { %1069 = vmatpush.msrb.mxu2 %v387_v50  ;;  %1088 = vmatpush.msrb.mxu3 %v404_v51  ;;  %v437_v50 = vld [vmem:[%s3236_s1 + $0xcd8] sm:$0xff]  ;;  %v452_v51 = vld [vmem:[%s3236_s1 + $0xd50] sm:$0xff] }
  0xba   :  { %1030 = vmatpush.msrb.mxu0 %v354_v52  ;;  %1049 = vmatpush.msrb.mxu1 %v371_v53  ;;  %v469_v52 = vld [vmem:[%s3236_s1 + $0xdd8] sm:$0xff]  ;;  %v419_v53 = vld [vmem:[%s3236_s1 + $0xc48] sm:$0xff] }
  0xbb   :  { %1070 = vmatpush.msrb.mxu2 %v386_v54  ;;  %1089 = vmatpush.msrb.mxu3 %v403_v55  ;;  %v436_v54 = vld [vmem:[%s3236_s1 + $0xcd0] sm:$0xff]  ;;  %v451_v55 = vld [vmem:[%s3236_s1 + $0xd48] sm:$0xff] }
  0xbc   :  { %1031 = vmatpush.msrb.mxu0 %v353_v56  ;;  %1050 = vmatpush.msrb.mxu1 %v370_v57  ;;  %v468_v56 = vld [vmem:[%s3236_s1 + $0xdd0] sm:$0xff]  ;;  %v418_v57 = vld [vmem:[%s3236_s1 + $0xc40] sm:$0xff] }
  0xbd   :  { %1071 = vmatpush.msrb.mxu2 %v385_v58  ;;  %1090 = vmatpush.msrb.mxu3 %v402_v59  ;;  %v435_v58 = vld [vmem:[%s3236_s1 + $0xcc8] sm:$0xff]  ;;  %v450_v59 = vld [vmem:[%s3236_s1 + $0xd40] sm:$0xff] }
  0xbe   :  { %1032 = vmatpush.msrb.mxu0 %v352_v60  ;;  %1051 = vmatpush.msrb.mxu1 %v369_v61  ;;  %v467_v60 = vld [vmem:[%s3236_s1 + $0xdc8] sm:$0xff]  ;;  %v417_v61 = vld [vmem:[%s3236_s1 + $0xc38] sm:$0xff] }
  0xbf   :  { %1072 = vmatpush.msrb.mxu2 %v384_v62  ;;  %1091 = vmatpush.msrb.mxu3 %v401_v63  ;;  %v434_v62 = vld [vmem:[%s3236_s1 + $0xcc0] sm:$0xff]  ;;  %v449_v63 = vld [vmem:[%s3236_s1 + $0xd38] sm:$0xff] }
  0xc0   :  { %1033 = vmatpush.msrb.mxu0 %v351_v0  ;;  %1052 = vmatpush.msrb.mxu1 %v368_v1  ;;  %v466_v0 = vld [vmem:[%s3236_s1 + $0xdc0] sm:$0xff]  ;;  %v416_v1 = vld [vmem:[%s3236_s1 + $0xc30] sm:$0xff] }
  0xc1   :  { %1073 = vmatpush.msrb.mxu2 %v383_v2  ;;  %1092 = vmatpush.msrb.mxu3 %v400_v3  ;;  %v433_v2 = vld [vmem:[%s3236_s1 + $0xcb8] sm:$0xff]  ;;  %v448_v3 = vld [vmem:[%s3236_s1 + $0xd30] sm:$0xff] }
  0xc2   :  { %1034 = vmatpush.msrb.mxu0 %v350_v4  ;;  %1053 = vmatpush.msrb.mxu1 %v367_v5  ;;  %v465_v4 = vld [vmem:[%s3236_s1 + $0xdb8] sm:$0xff]  ;;  %v415_v5 = vld [vmem:[%s3236_s1 + $0xc28] sm:$0xff] }
  0xc3   :  { %1074 = vmatpush.msrb.mxu2 %v382_v6  ;;  %1093 = vmatpush.msrb.mxu3 %v399_v7  ;;  %v432_v6 = vld [vmem:[%s3236_s1 + $0xcb0] sm:$0xff]  ;;  %v447_v7 = vld [vmem:[%s3236_s1 + $0xd28] sm:$0xff] }
  0xc4   :  { %1035 = vmatpush.msrb.mxu0 %v349_v8  ;;  %1054 = vmatpush.msrb.mxu1 %v366_v9  ;;  %v464_v8 = vld [vmem:[%s3236_s1 + $0xdb0] sm:$0xff]  ;;  %v414_v9 = vld [vmem:[%s3236_s1 + $0xc20] sm:$0xff] }
  0xc5   :  { %1075 = vmatpush.msrb.mxu2 %v381_v10  ;;  %1094 = vmatpush.msrb.mxu3 %v398_v11  ;;  %v431_v10 = vld [vmem:[%s3236_s1 + $0xca8] sm:$0xff]  ;;  %v446_v11 = vld [vmem:[%s3236_s1 + $0xd20] sm:$0xff] }
  0xc6   :  { %1036 = vmatpush.msrb.mxu0 %v348_v12  ;;  %1055 = vmatpush.msrb.mxu1 %v365_v13  ;;  %v463_v12 = vld [vmem:[%s3236_s1 + $0xda8] sm:$0xff]  ;;  %v413_v13 = vld [vmem:[%s3236_s1 + $0xc18] sm:$0xff] }
  0xc7   :  { %1076 = vmatpush.msrb.mxu2 %v380_v14  ;;  %1095 = vmatpush.msrb.mxu3 %v397_v15  ;;  %v430_v14 = vld [vmem:[%s3236_s1 + $0xca0] sm:$0xff]  ;;  %v445_v15 = vld [vmem:[%s3236_s1 + $0xd18] sm:$0xff] }
  0xc8   :  { %1037 = vmatpush.msrb.mxu0 %v347_v16  ;;  %1056 = vmatpush.msrb.mxu1 %v364_v17  ;;  %v462_v16 = vld [vmem:[%s3236_s1 + $0xda0] sm:$0xff]  ;;  %v412_v17 = vld [vmem:[%s3236_s1 + $0xc10] sm:$0xff] }
  0xc9   :  { %1077 = vmatpush.msrb.mxu2 %v379_v19  ;;  %1096 = vmatpush.msrb.mxu3 %v396_v20  ;;  %v444_v19 = vld [vmem:[%s3236_s1 + $0xd10] sm:$0xff]  ;;  %v461_v20 = vld [vmem:[%s3236_s1 + $0xd98] sm:$0xff] }
  0xca   :  { %1038 = vmatpush.msrb.mxu0 %v346_v21  ;;  %1057 = vmatpush.msrb.mxu1 %v363_v22  ;;  %v411_v21 = vld [vmem:[%s3236_s1 + $0xc08] sm:$0xff]  ;;  %v428_v22 = vld [vmem:[%s3236_s1 + $0xc90] sm:$0xff] }
  0xcb   :  { %1078 = vmatpush.msrb.mxu2 %v378_v23  ;;  %1097 = vmatpush.msrb.mxu3 %v395_v24  ;;  %v25_v23 = vld [vmem:[%s3235_s0 + $0x38] sm:$0xff]  ;;  %v443_v24 = vld [vmem:[%s3236_s1 + $0xd08] sm:$0xff] }
  0xcc   :  { %1039 = vmatmul.f32.vlgmr.msrb.gmra.mxu0 %v577_v25  ;;  %1079 = vmatmul.f32.vlgmr.msrb.gmra.mxu2 %v579_v26  ;;  %v460_v25 = vld [vmem:[%s3236_s1 + $0xd90] sm:$0xff]  ;;  %582 = vst [vmem:[#allocation1 + $0x20] ss:$4 sm:$0xff] %v25_v23  ;;  %v410_v26 = vld [vmem:[%s3236_s1 + $0xc00] sm:$0xff]  ;;  %v493_v23 = vld [vmem:[%s3236_s1 + $0xe98] sm:$0xff] }
  0xcd   :  { %1103 = vmatpush.msra.mxu0 %v425_v27  ;;  %1143 = vmatpush.msra.mxu2 %v457_v29  ;;  %v427_v27 = vld [vmem:[%s3236_s1 + $0xc88] sm:$0xff]  ;;  %v442_v29 = vld [vmem:[%s3236_s1 + $0xd00] sm:$0xff] }
  0xce   :  { %1058 = vmatpush.msrb.mxu1 %v362_v30  ;;  %1098 = vmatpush.msrb.mxu3 %v394_v28  ;;  %v459_v30 = vld [vmem:[%s3236_s1 + $0xd88] sm:$0xff]  ;;  %v583_v28 = vld.sshfl [vmem:[#allocation1] sm:$0xff pattern:$0x73625140] }
  0xcf   :  { %1059 = vmatmul.f32.vlgmr.msrb.gmra.mxu1 %v578_v32  ;;  %1099 = vmatmul.f32.vlgmr.msrb.gmra.mxu3 %v580_v31  ;;  %v585_v32 = vld.sshfl [vmem:[#allocation1 + $0x10] sm:$0xff pattern:$0x73625140]  ;;  %v489_v31 = vld [vmem:[%s3236_s1 + $0xe78] sm:$0xff] }
  0xd0   :  { %1104 = vmatpush.msra.mxu0 %v424_v33  ;;  %1123 = vmatpush.msra.mxu1 %v441_v34  ;;  %v521_v33 = vld [vmem:[%s3236_s1 + $0xf78] sm:$0xff]  ;;  %v426_v34 = vld [vmem:[%s3236_s1 + $0xc80] sm:$0xff] }
  0xd1   :  { %1144 = vmatpush.msra.mxu2 %v456_v35  ;;  %1163 = vmatpush.msra.mxu3 %v473_v36  ;;  %v458_v35 = vld [vmem:[%s3236_s1 + $0xd80] sm:$0xff]  ;;  %v584_v36 = vld.sshfl [vmem:[#allocation1 + $0x8] sm:$0xff pattern:$0x73625140] }
  0xd2   :  { %1105 = vmatpush.msra.mxu0 %v423_v37  ;;  %1124 = vmatpush.msra.mxu1 %v440_v38  ;;  %v586_v37 = vld.sshfl [vmem:[#allocation1 + $0x18] sm:$0xff pattern:$0x73625140]  ;;  %v488_v38 = vld [vmem:[%s3236_s1 + $0xe70] sm:$0xff] }
  0xd3   :  { %1145 = vmatpush.msra.mxu2 %v455_v39  ;;  %1164 = vmatpush.msra.mxu3 %v472_v40  ;;  %v505_v39 = vld [vmem:[%s3236_s1 + $0xef8] sm:$0xff]  ;;  %v520_v40 = vld [vmem:[%s3236_s1 + $0xf70] sm:$0xff] }
  0xd4   :  { %1106 = vmatpush.msra.mxu0 %v422_v41  ;;  %1125 = vmatpush.msra.mxu1 %v439_v42  ;;  %v537_v41 = vld [vmem:[%s3236_s1 + $0xff8] sm:$0xff]  ;;  %v487_v42 = vld [vmem:[%s3236_s1 + $0xe68] sm:$0xff] }
  0xd5   :  { %1146 = vmatpush.msra.mxu2 %v454_v43  ;;  %1165 = vmatpush.msra.mxu3 %v471_v44  ;;  %v504_v43 = vld [vmem:[%s3236_s1 + $0xef0] sm:$0xff]  ;;  %v519_v44 = vld [vmem:[%s3236_s1 + $0xf68] sm:$0xff] }
  0xd6   :  { %1107 = vmatpush.msra.mxu0 %v421_v45  ;;  %1126 = vmatpush.msra.mxu1 %v438_v46  ;;  %v536_v45 = vld [vmem:[%s3236_s1 + $0xff0] sm:$0xff]  ;;  %v486_v46 = vld [vmem:[%s3236_s1 + $0xe60] sm:$0xff] }
  0xd7   :  { %1147 = vmatpush.msra.mxu2 %v453_v47  ;;  %1166 = vmatpush.msra.mxu3 %v470_v48  ;;  %v503_v47 = vld [vmem:[%s3236_s1 + $0xee8] sm:$0xff]  ;;  %v518_v48 = vld [vmem:[%s3236_s1 + $0xf60] sm:$0xff] }
  0xd8   :  { %1108 = vmatpush.msra.mxu0 %v420_v49  ;;  %1127 = vmatpush.msra.mxu1 %v437_v50  ;;  %v535_v49 = vld [vmem:[%s3236_s1 + $0xfe8] sm:$0xff]  ;;  %v485_v50 = vld [vmem:[%s3236_s1 + $0xe58] sm:$0xff] }
  0xd9   :  { %1148 = vmatpush.msra.mxu2 %v452_v51  ;;  %1167 = vmatpush.msra.mxu3 %v469_v52  ;;  %v502_v51 = vld [vmem:[%s3236_s1 + $0xee0] sm:$0xff]  ;;  %v517_v52 = vld [vmem:[%s3236_s1 + $0xf58] sm:$0xff] }
  0xda   :  { %1109 = vmatpush.msra.mxu0 %v419_v53  ;;  %1128 = vmatpush.msra.mxu1 %v436_v54  ;;  %v534_v53 = vld [vmem:[%s3236_s1 + $0xfe0] sm:$0xff]  ;;  %v484_v54 = vld [vmem:[%s3236_s1 + $0xe50] sm:$0xff] }
  0xdb   :  { %1149 = vmatpush.msra.mxu2 %v451_v55  ;;  %1168 = vmatpush.msra.mxu3 %v468_v56  ;;  %v501_v55 = vld [vmem:[%s3236_s1 + $0xed8] sm:$0xff]  ;;  %v516_v56 = vld [vmem:[%s3236_s1 + $0xf50] sm:$0xff] }
  0xdc   :  { %1110 = vmatpush.msra.mxu0 %v418_v57  ;;  %1129 = vmatpush.msra.mxu1 %v435_v58  ;;  %v533_v57 = vld [vmem:[%s3236_s1 + $0xfd8] sm:$0xff]  ;;  %v483_v58 = vld [vmem:[%s3236_s1 + $0xe48] sm:$0xff] }
  0xdd   :  { %1150 = vmatpush.msra.mxu2 %v450_v59  ;;  %1169 = vmatpush.msra.mxu3 %v467_v60  ;;  %v500_v59 = vld [vmem:[%s3236_s1 + $0xed0] sm:$0xff]  ;;  %v515_v60 = vld [vmem:[%s3236_s1 + $0xf48] sm:$0xff] }
  0xde   :  { %1111 = vmatpush.msra.mxu0 %v417_v61  ;;  %1130 = vmatpush.msra.mxu1 %v434_v62  ;;  %v532_v61 = vld [vmem:[%s3236_s1 + $0xfd0] sm:$0xff]  ;;  %v482_v62 = vld [vmem:[%s3236_s1 + $0xe40] sm:$0xff] }
  0xdf   :  { %1151 = vmatpush.msra.mxu2 %v449_v63  ;;  %1170 = vmatpush.msra.mxu3 %v466_v0  ;;  %v499_v63 = vld [vmem:[%s3236_s1 + $0xec8] sm:$0xff]  ;;  %v514_v0 = vld [vmem:[%s3236_s1 + $0xf40] sm:$0xff] }
  0xe0   :  { %1112 = vmatpush.msra.mxu0 %v416_v1  ;;  %1131 = vmatpush.msra.mxu1 %v433_v2  ;;  %v531_v1 = vld [vmem:[%s3236_s1 + $0xfc8] sm:$0xff]  ;;  %v481_v2 = vld [vmem:[%s3236_s1 + $0xe38] sm:$0xff] }
  0xe1   :  { %1152 = vmatpush.msra.mxu2 %v448_v3  ;;  %1171 = vmatpush.msra.mxu3 %v465_v4  ;;  %v498_v3 = vld [vmem:[%s3236_s1 + $0xec0] sm:$0xff]  ;;  %v513_v4 = vld [vmem:[%s3236_s1 + $0xf38] sm:$0xff] }
  0xe2   :  { %1113 = vmatpush.msra.mxu0 %v415_v5  ;;  %1132 = vmatpush.msra.mxu1 %v432_v6  ;;  %v530_v5 = vld [vmem:[%s3236_s1 + $0xfc0] sm:$0xff]  ;;  %v480_v6 = vld [vmem:[%s3236_s1 + $0xe30] sm:$0xff] }
  0xe3   :  { %1153 = vmatpush.msra.mxu2 %v447_v7  ;;  %1172 = vmatpush.msra.mxu3 %v464_v8  ;;  %v497_v7 = vld [vmem:[%s3236_s1 + $0xeb8] sm:$0xff]  ;;  %v512_v8 = vld [vmem:[%s3236_s1 + $0xf30] sm:$0xff] }
  0xe4   :  { %1114 = vmatpush.msra.mxu0 %v414_v9  ;;  %1133 = vmatpush.msra.mxu1 %v431_v10  ;;  %v529_v9 = vld [vmem:[%s3236_s1 + $0xfb8] sm:$0xff]  ;;  %v479_v10 = vld [vmem:[%s3236_s1 + $0xe28] sm:$0xff] }
  0xe5   :  { %1154 = vmatpush.msra.mxu2 %v446_v11  ;;  %1173 = vmatpush.msra.mxu3 %v463_v12  ;;  %v496_v11 = vld [vmem:[%s3236_s1 + $0xeb0] sm:$0xff]  ;;  %v511_v12 = vld [vmem:[%s3236_s1 + $0xf28] sm:$0xff] }
  0xe6   :  { %1115 = vmatpush.msra.mxu0 %v413_v13  ;;  %1134 = vmatpush.msra.mxu1 %v430_v14  ;;  %v528_v13 = vld [vmem:[%s3236_s1 + $0xfb0] sm:$0xff]  ;;  %v478_v14 = vld [vmem:[%s3236_s1 + $0xe20] sm:$0xff] }
  0xe7   :  { %1155 = vmatpush.msra.mxu2 %v445_v15  ;;  %1174 = vmatpush.msra.mxu3 %v462_v16  ;;  %v495_v15 = vld [vmem:[%s3236_s1 + $0xea8] sm:$0xff]  ;;  %v510_v16 = vld [vmem:[%s3236_s1 + $0xf20] sm:$0xff] }
  0xe8   :  { %1116 = vmatpush.msra.mxu0 %v412_v17  ;;  %1135 = vmatpush.msra.mxu1 %v429_v18  ;;  %v527_v17 = vld [vmem:[%s3236_s1 + $0xfa8] sm:$0xff]  ;;  %v477_v18 = vld [vmem:[%s3236_s1 + $0xe18] sm:$0xff] }
  0xe9   :  { %1156 = vmatpush.msra.mxu2 %v444_v19  ;;  %1175 = vmatpush.msra.mxu3 %v461_v20  ;;  %v494_v19 = vld [vmem:[%s3236_s1 + $0xea0] sm:$0xff]  ;;  %v509_v20 = vld [vmem:[%s3236_s1 + $0xf18] sm:$0xff] }
  0xea   :  { %1117 = vmatpush.msra.mxu0 %v411_v21  ;;  %1136 = vmatpush.msra.mxu1 %v428_v22  ;;  %v526_v21 = vld [vmem:[%s3236_s1 + $0xfa0] sm:$0xff]  ;;  %v476_v22 = vld [vmem:[%s3236_s1 + $0xe10] sm:$0xff] }
  0xeb   :  { %1157 = vmatpush.msra.mxu2 %v443_v24  ;;  %1176 = vmatpush.msra.mxu3 %v460_v25  ;;  %v508_v24 = vld [vmem:[%s3236_s1 + $0xf10] sm:$0xff]  ;;  %v525_v25 = vld [vmem:[%s3236_s1 + $0xf98] sm:$0xff] }
  0xec   :  { %1118 = vmatpush.msra.mxu0 %v410_v26  ;;  %1137 = vmatpush.msra.mxu1 %v427_v27  ;;  %v475_v26 = vld [vmem:[%s3236_s1 + $0xe08] sm:$0xff]  ;;  %v492_v27 = vld [vmem:[%s3236_s1 + $0xe90] sm:$0xff] }
  0xed   :  { %1158 = vmatpush.msra.mxu2 %v442_v29  ;;  %1177 = vmatpush.msra.mxu3 %v459_v30  ;;  %v507_v29 = vld [vmem:[%s3236_s1 + $0xf08] sm:$0xff]  ;;  %v524_v30 = vld [vmem:[%s3236_s1 + $0xf90] sm:$0xff] }
  0xee   :  { %1119 = vmatmul.f32.vlgmr.msra.gmra.mxu0 %v583_v28  ;;  %1159 = vmatmul.f32.vlgmr.msra.gmra.mxu2 %v585_v32  ;;  %v474_v28 = vld [vmem:[%s3236_s1 + $0xe00] sm:$0xff]  ;;  %v491_v32 = vld [vmem:[%s3236_s1 + $0xe88] sm:$0xff] }
  0xef   :  { %1183 = vmatpush.msrb.mxu0 %v489_v31  ;;  %1223 = vmatpush.msrb.mxu2 %v521_v33  ;;  %v506_v31 = vld [vmem:[%s3236_s1 + $0xf00] sm:$0xff]  ;;  %v523_v33 = vld [vmem:[%s3236_s1 + $0xf88] sm:$0xff] }
  0xf0   :  { %1138 = vmatpush.msra.mxu1 %v426_v34  ;;  %1178 = vmatpush.msra.mxu3 %v458_v35  ;;  %v587_v34 = vld.sshfl [vmem:[#allocation1 + $0x20] sm:$0xff pattern:$0x73625140]  ;;  %v589_v35 = vld.sshfl [vmem:[#allocation1 + $0x30] sm:$0xff pattern:$0x73625140] }
  0xf1   :  { %1139 = vmatmul.f32.vlgmr.msra.gmra.mxu1 %v584_v36  ;;  %1179 = vmatmul.f32.vlgmr.msra.gmra.mxu3 %v586_v37  ;;  %v490_v36 = vld [vmem:[%s3236_s1 + $0xe80] sm:$0xff] }
  0xf2   :  { %1184 = vmatpush.msrb.mxu0 %v488_v38  ;;  %1203 = vmatpush.msrb.mxu1 %v505_v39  ;;  %v522_v37 = vld [vmem:[%s3236_s1 + $0xf80] sm:$0xff]  ;;  %v588_v38 = vld.sshfl [vmem:[#allocation1 + $0x28] sm:$0xff pattern:$0x73625140] }
  0xf3   :  { %1224 = vmatpush.msrb.mxu2 %v520_v40  ;;  %1243 = vmatpush.msrb.mxu3 %v537_v41  ;;  %v590_v39 = vld.sshfl [vmem:[#allocation1 + $0x38] sm:$0xff pattern:$0x73625140]  ;;  %v1480_v40 = vld [vmem:[%s3237_s2] ss:$0 sm:$0xff]  ;;  %v640_v41 = vpop.f32.mrf.mxu0 }
  0xf4   :  { %1185 = vmatpush.msrb.mxu0 %v487_v42  ;;  %1204 = vmatpush.msrb.mxu1 %v504_v43  ;;  %v641_v42 = vadd.f32 %v1480_v40, %v640_v41  ;;  %v660_v43 = vpop.f32.mrf.mxu1 }
  0xf5   :  { %1225 = vmatpush.msrb.mxu2 %v519_v44  ;;  %1244 = vmatpush.msrb.mxu3 %v536_v45  ;;  %v680_v45 = vpop.f32.mrf.mxu2 }
  0xf6   :  { %1186 = vmatpush.msrb.mxu0 %v486_v46  ;;  %1205 = vmatpush.msrb.mxu1 %v503_v47  ;;  %v661_v44 = vadd.f32 %v660_v43, %v641_v42  ;;  %v700_v47 = vpop.f32.mrf.mxu3 }
  0xf7   :  { %1226 = vmatpush.msrb.mxu2 %v518_v48  ;;  %1245 = vmatpush.msrb.mxu3 %v535_v49 }
  0xf8   :  { %1187 = vmatpush.msrb.mxu0 %v485_v50  ;;  %1206 = vmatpush.msrb.mxu1 %v502_v51  ;;  %v681_v46 = vadd.f32 %v680_v45, %v661_v44 }
  0xf9   :  { %1227 = vmatpush.msrb.mxu2 %v517_v52  ;;  %1246 = vmatpush.msrb.mxu3 %v534_v53 }
  0xfa   :  { %1188 = vmatpush.msrb.mxu0 %v484_v54  ;;  %1207 = vmatpush.msrb.mxu1 %v501_v55  ;;  %v701_v48 = vadd.f32 %v700_v47, %v681_v46 }
  0xfb   :  { %1228 = vmatpush.msrb.mxu2 %v516_v56  ;;  %1247 = vmatpush.msrb.mxu3 %v533_v57  ;;  %v720_v49 = vpop.f32.mrf.mxu0 }
  0xfc   :  { %1189 = vmatpush.msrb.mxu0 %v483_v58  ;;  %1208 = vmatpush.msrb.mxu1 %v500_v59  ;;  %v721_v50 = vadd.f32 %v720_v49, %v701_v48  ;;  %v740_v51 = vpop.f32.mrf.mxu1 }
  0xfd   :  { %1229 = vmatpush.msrb.mxu2 %v515_v60  ;;  %1248 = vmatpush.msrb.mxu3 %v532_v61  ;;  %v760_v53 = vpop.f32.mrf.mxu2 }
  0xfe   :  { %1190 = vmatpush.msrb.mxu0 %v482_v62  ;;  %1209 = vmatpush.msrb.mxu1 %v499_v63  ;;  %v741_v52 = vadd.f32 %v740_v51, %v721_v50  ;;  %v780_v55 = vpop.f32.mrf.mxu3 }
  0xff   :  { %1230 = vmatpush.msrb.mxu2 %v514_v0  ;;  %1249 = vmatpush.msrb.mxu3 %v531_v1 }
 0x100   :  { %1191 = vmatpush.msrb.mxu0 %v481_v2  ;;  %1210 = vmatpush.msrb.mxu1 %v498_v3  ;;  %v761_v54 = vadd.f32 %v760_v53, %v741_v52 }
 0x101   :  { %1231 = vmatpush.msrb.mxu2 %v513_v4  ;;  %1250 = vmatpush.msrb.mxu3 %v530_v5 }
 0x102   :  { %1192 = vmatpush.msrb.mxu0 %v480_v6  ;;  %1211 = vmatpush.msrb.mxu1 %v497_v7  ;;  %v781_v57 = vadd.f32 %v780_v55, %v761_v54 }
 0x103   :  { %1232 = vmatpush.msrb.mxu2 %v512_v8  ;;  %1251 = vmatpush.msrb.mxu3 %v529_v9  ;;  %v800_v56 = vpop.f32.mrf.mxu0 }
 0x104   :  { %1193 = vmatpush.msrb.mxu0 %v479_v10  ;;  %1212 = vmatpush.msrb.mxu1 %v496_v11  ;;  %v801_v58 = vadd.f32 %v800_v56, %v781_v57  ;;  %v820_v59 = vpop.f32.mrf.mxu1 }
 0x105   :  { %1233 = vmatpush.msrb.mxu2 %v511_v12  ;;  %1252 = vmatpush.msrb.mxu3 %v528_v13  ;;  %v840_v60 = vpop.f32.mrf.mxu2 }
 0x106   :  { %1194 = vmatpush.msrb.mxu0 %v478_v14  ;;  %1213 = vmatpush.msrb.mxu1 %v495_v15  ;;  %v821_v61 = vadd.f32 %v820_v59, %v801_v58  ;;  %v860_v63 = vpop.f32.mrf.mxu3  ;;  %v1278_v15 = vld [vmem:[%s3238_s3 + $0x70] sm:$0xff] }
 0x107   :  { %1234 = vmatpush.msrb.mxu2 %v510_v16  ;;  %1253 = vmatpush.msrb.mxu3 %v527_v17  ;;  %v1279_v16 = vld [vmem:[%s3238_s3 + $0x78] sm:$0xff] }
 0x108   :  { %1195 = vmatpush.msrb.mxu0 %v477_v18  ;;  %1214 = vmatpush.msrb.mxu1 %v494_v19  ;;  %v841_v62 = vadd.f32 %v840_v60, %v821_v61  ;;  %v1276_v18 = vld [vmem:[%s3238_s3 + $0x60] sm:$0xff]  ;;  %v1277_v19 = vld [vmem:[%s3238_s3 + $0x68] sm:$0xff] }
 0x109   :  { %1235 = vmatpush.msrb.mxu2 %v509_v20  ;;  %1254 = vmatpush.msrb.mxu3 %v526_v21 }
 0x10a   :  { %1196 = vmatpush.msrb.mxu0 %v476_v22  ;;  %1215 = vmatpush.msrb.mxu1 %v493_v23  ;;  %v861_v1 = vadd.f32 %v860_v63, %v841_v62  ;;  %v1274_v22 = vld [vmem:[%s3238_s3 + $0x50] sm:$0xff]  ;;  %v1275_v23 = vld [vmem:[%s3238_s3 + $0x58] sm:$0xff] }
 0x10b   :  { %1236 = vmatpush.msrb.mxu2 %v508_v24  ;;  %1255 = vmatpush.msrb.mxu3 %v525_v25  ;;  %v880_v0 = vpop.f32.mrf.mxu0  ;;  %v1272_v24 = vld [vmem:[%s3238_s3 + $0x40] sm:$0xff]  ;;  %v1273_v25 = vld [vmem:[%s3238_s3 + $0x48] sm:$0xff] }
 0x10c   :  { %1197 = vmatpush.msrb.mxu0 %v475_v26  ;;  %1216 = vmatpush.msrb.mxu1 %v492_v27  ;;  %v881_v2 = vadd.f32 %v880_v0, %v861_v1  ;;  %v900_v3 = vpop.f32.mrf.mxu1  ;;  %v1270_v27 = vld [vmem:[%s3238_s3 + $0x30] sm:$0xff] }
 0x10d   :  { %1237 = vmatpush.msrb.mxu2 %v507_v29  ;;  %1256 = vmatpush.msrb.mxu3 %v524_v30  ;;  %v920_v4 = vpop.f32.mrf.mxu2  ;;  %v1271_v29 = vld [vmem:[%s3238_s3 + $0x38] sm:$0xff]  ;;  %v1268_v30 = vld [vmem:[%s3238_s3 + $0x20] sm:$0xff] }
 0x10e   :  { %1198 = vmatpush.msrb.mxu0 %v474_v28  ;;  %1217 = vmatpush.msrb.mxu1 %v491_v32  ;;  %v901_v5 = vadd.f32 %v900_v3, %v881_v2  ;;  %v940_v7 = vpop.f32.mrf.mxu3  ;;  %v1269_v32 = vld [vmem:[%s3238_s3 + $0x28] sm:$0xff] }
 0x10f   :  { %1238 = vmatpush.msrb.mxu2 %v506_v31  ;;  %1257 = vmatpush.msrb.mxu3 %v523_v33  ;;  %v1266_v31 = vld [vmem:[%s3238_s3 + $0x10] sm:$0xff]  ;;  %v1267_v33 = vld [vmem:[%s3238_s3 + $0x18] sm:$0xff] }
 0x110   :  { %1199 = vmatmul.f32.vlgmr.msrb.gmra.mxu0 %v587_v34  ;;  %1239 = vmatmul.f32.vlgmr.msrb.gmra.mxu2 %v589_v35  ;;  %v921_v6 = vadd.f32 %v920_v4, %v901_v5  ;;  %v1264_v34 = vld [vmem:[%s3238_s3] sm:$0xff] }
 0x111   :  { %1218 = vmatpush.msrb.mxu1 %v490_v36  ;;  %1258 = vmatpush.msrb.mxu3 %v522_v37  ;;  %v1265_v36 = vld [vmem:[%s3238_s3 + $0x8] sm:$0xff]  ;;  %s1523_s3 = smov [#allocation2]  }
 0x112   :  { %1219 = vmatmul.f32.vlgmr.msrb.gmra.mxu1 %v588_v38  ;;  %1259 = vmatmul.f32.vlgmr.msrb.gmra.mxu3 %v590_v39  ;;  %v941_v9 = vadd.f32 %v940_v7, %v921_v6  ;;  %s1460_s12 = sshll.u32 %s1523_s3, 4  ;;  %s1461_s12 = int_to_ptr.vmem [resolvable:$true] %s1460_s12 }
 0x113   :  { %1336 = vmatpush.msra.mxu2 %v1278_v15  ;;  %1356 = vmatpush.msra.mxu3 %v1279_v16 }
 0x114   :  { %1296 = vmatpush.msra.mxu0 %v1276_v18  ;;  %1316 = vmatpush.msra.mxu1 %v1277_v19 }
 0x115   :  { %1337 = vmatpush.msra.mxu2 %v1274_v22  ;;  %1357 = vmatpush.msra.mxu3 %v1275_v23 }
 0x116   :  { %1297 = vmatpush.msra.mxu0 %v1272_v24  ;;  %1317 = vmatpush.msra.mxu1 %v1273_v25 }
 0x117   :  { %1338 = vmatpush.msra.mxu2 %v1270_v27  ;;  %1358 = vmatpush.msra.mxu3 %v1271_v29 }
 0x118   :  { %1298 = vmatpush.msra.mxu0 %v1268_v30  ;;  %1318 = vmatpush.msra.mxu1 %v1269_v32 }
 0x119   :  { %1339 = vmatpush.msra.mxu2 %v1266_v31  ;;  %1359 = vmatpush.msra.mxu3 %v1267_v33 }
 0x11a   :  { %1299 = vmatpush.msra.mxu0 %v1264_v34  ;;  %1319 = vmatpush.msra.mxu1 %v1265_v36 }
 0x127   :  { %v960_v8 = vpop.f32.mrf.mxu0 }
 0x128   :  { %v961_v10 = vadd.f32 %v960_v8, %v941_v9 }
 0x12a   :  { %v980_v11 = vpop.f32.mrf.mxu1 }
 0x12b   :  { %v981_v13 = vadd.f32 %v980_v11, %v961_v10 }
 0x12d   :  { %v1000_v12 = vpop.f32.mrf.mxu2 }
 0x12e   :  { %v1001_v14 = vadd.f32 %v1000_v12, %v981_v13 }
 0x130   :  { %v1020_v17 = vpop.f32.mrf.mxu3 }
 0x131   :  { %v1021_v21 = vadd.f32 %v1020_v17, %v1001_v14 }
 0x149   :  { %v1040_v20 = vpop.f32.mrf.mxu0 }
 0x14a   :  { %v1041_v26 = vadd.f32 %v1040_v20, %v1021_v21 }
 0x14c   :  { %v1060_v28 = vpop.f32.mrf.mxu1 }
 0x14d   :  { %v1061_v37 = vadd.f32 %v1060_v28, %v1041_v26 }
 0x14f   :  { %v1080_v35 = vpop.f32.mrf.mxu2 }
 0x150   :  { %v1081_v38 = vadd.f32 %v1080_v35, %v1061_v37 }
 0x152   :  { %v1100_v39 = vpop.f32.mrf.mxu3 }
 0x153   :  { %v1101_v41 = vadd.f32 %v1100_v39, %v1081_v38 }
 0x16b   :  { %v1120_v40 = vpop.f32.mrf.mxu0 }
 0x16c   :  { %v1121_v42 = vadd.f32 %v1120_v40, %v1101_v41 }
 0x16e   :  { %v1140_v43 = vpop.f32.mrf.mxu1 }
 0x16f   :  { %v1141_v45 = vadd.f32 %v1140_v43, %v1121_v42 }
 0x171   :  { %v1160_v44 = vpop.f32.mrf.mxu2 }
 0x172   :  { %v1161_v46 = vadd.f32 %v1160_v44, %v1141_v45 }
 0x174   :  { %v1180_v47 = vpop.f32.mrf.mxu3 }
 0x175   :  { %v1181_v48 = vadd.f32 %v1180_v47, %v1161_v46 }
 0x18d   :  { %v1200_v49 = vpop.f32.mrf.mxu0 }
 0x18e   :  { %v1201_v50 = vadd.f32 %v1200_v49, %v1181_v48 }
 0x18f   :  { %v1220_v51 = vpop.f32.mrf.mxu1 }
 0x190   :  { %v1221_v52 = vadd.f32 %v1220_v51, %v1201_v50 }
 0x193   :  { %v1240_v53 = vpop.f32.mrf.mxu2 }
 0x194   :  { %v1241_v54 = vadd.f32 %v1240_v53, %v1221_v52 }
 0x195   :  { %v1260_v55 = vpop.f32.mrf.mxu3 }
 0x196   :  { %v1261_v56 = vadd.f32 %v1260_v55, %v1241_v54 }
 0x198   :  { %v1263_v57 = vmax.f32 %v1261_v56, 0.0 }
 0x19a   :  { %1471 = vmatmul.msk.f32.vlgmr.msra.gmra.mxu0 %vm1280_vm0, %v1263_v57  ;;  %1472 = vmatmul.msk.f32.vlgmr.msra.gmra.mxu1 %vm1280_vm0, %v1263_v57 }
 0x19b   :  { %1473 = vmatmul.msk.f32.vlgmr.msra.gmra.mxu2 %vm1280_vm0, %v1263_v57  ;;  %1474 = vmatmul.msk.f32.vlgmr.msra.gmra.mxu3 %vm1280_vm0, %v1263_v57 }
 0x217   :  { %v1301_v58 = vpop.f32.mrf.mxu0  ;;  %v1321_v59 = vpop.f32.mrf.mxu1 }
 0x218   :  { %v1475_v60 = vmul.f32 -1.442695, %v1301_v58  ;;  %v1476_v61 = vmul.f32 -1.442695, %v1321_v59 }
 0x21a   :  { %1481 = vpow2.f32 %v1475_v60 }
 0x21b   :  { %1483 = vpow2.f32 %v1476_v61 }
 0x21e   :  { %v1341_v62 = vpop.f32.mrf.mxu2  ;;  %v1361_v63 = vpop.f32.mrf.mxu3 }
 0x21f   :  { %v1477_v0 = vmul.f32 -1.442695, %v1341_v62  ;;  %v1478_v1 = vmul.f32 -1.442695, %v1361_v63 }
 0x220   :  { %v1482_v2 = vpop.eup %1481 }
 0x221   :  { %v1484_v3 = vpop.eup %1483  ;;  %v3202_v4 = vadd.f32 1.0, %v1482_v2  ;;  %1485 = vpow2.f32 %v1477_v0 }
 0x222   :  { %v1377_v5 = vadd.f32 1.0, %v1484_v3  ;;  %1487 = vpow2.f32 %v1478_v1 }
 0x223   :  { %1489 = vrcp.f32 %v3202_v4  ;;  %vm1385_vm3 = vweird.f32 %v3202_v4  ;;  %v1391_v38 = vand.u32 2147483648, %v3202_v4  ;;  %v1389_v42 = vand.u32 2147483647, %v3202_v4 }
 0x224   :  { %1491 = vrcp.f32 %v1377_v5  ;;  %v1406_v17 = vand.u32 2147483648, %v1377_v5  ;;  %vm1400_vm2 = vweird.f32 %v1377_v5  ;;  %v1404_v24 = vand.u32 2147483647, %v1377_v5 }
 0x225   :  { %v1392_v50 = vor.u32 1.1754944e-38, %v1391_v38 }
 0x226   :  { %v1407_v25 = vor.u32 1.1754944e-38, %v1406_v17  ;;  %vm1405_vm8 = vcmp.eq.f32.partialorder %v1404_v24, 8.507059e+37 }
 0x227   :  { %v1486_v6 = vpop.eup %1485 }
 0x228   :  { %v1488_v7 = vpop.eup %1487  ;;  %v1378_v8 = vadd.f32 1.0, %v1486_v6 }
 0x229   :  { %v3205_v9 = vpop.eup %1489  ;;  %v1379_v10 = vadd.f32 1.0, %v1488_v7 }
 0x22a   :  { %v1492_v11 = vpop.eup %1491  ;;  %v1381_v12 = vmul.f32 %v3205_v9, %v3202_v4  ;;  %1493 = vrcp.f32 %v1378_v8  ;;  %v1421_v27 = vand.u32 2147483648, %v1378_v8  ;;  %vm1386_vm6 = vweird.f32 %v3205_v9 }
 0x22b   :  { %v1396_v13 = vmul.f32 %v1492_v11, %v1377_v5  ;;  %1495 = vrcp.f32 %v1379_v10  ;;  %vm1401_vm1 = vweird.f32 %v1492_v11  ;;  %v1436_v28 = vand.u32 2147483648, %v1379_v10  ;;  %vm3221_vm11 = vmor %vm1385_vm3, %vm1386_vm6 }
 0x22c   :  { %v1382_v15 = vsub.f32 1.0, %v1381_v12  ;;  %vm3211_vm4 = vmor %vm1400_vm2, %vm1401_vm1  ;;  %v1419_v33 = vand.u32 2147483647, %v1378_v8  ;;  %v1434_v34 = vand.u32 2147483647, %v1379_v10  ;;  %vm1415_vm10 = vweird.f32 %v1378_v8 }
 0x22d   :  { %v1397_v14 = vsub.f32 1.0, %v1396_v13  ;;  %v1422_v41 = vor.u32 1.1754944e-38, %v1421_v27  ;;  %vm1430_vm12 = vweird.f32 %v1379_v10  ;;  %v1437_v44 = vor.u32 1.1754944e-38, %v1436_v28 }
 0x22e   :  { %v1383_v23 = vmul.f32 %v3205_v9, %v1382_v15  ;;  %vm1420_vm14 = vcmp.eq.f32.partialorder %v1419_v33, 8.507059e+37  ;;  %vm1435_vm0 = vcmp.eq.f32.partialorder %v1434_v34, 8.507059e+37  ;;  %vm1449_vm1 = vcmask 1045508  }
 0x22f   :  { %v1398_v16 = vmul.f32 %v1492_v11, %v1397_v14  ;;  %vm1390_vm2 = vcmp.eq.f32.partialorder %v1389_v42, 8.507059e+37  ;;  %vm1451_vm3 = vcmask 1043456  }
 0x230   :  { %v1494_v18 = vpop.eup %1493  ;;  %v1384_v36 = vadd.f32 %v3205_v9, %v1383_v23 }
 0x231   :  { %v1496_v19 = vpop.eup %1495  ;;  %v1411_v20 = vmul.f32 %v1494_v18, %v1378_v8  ;;  %v1399_v21 = vadd.f32 %v1492_v11, %v1398_v16  ;;  %vm1416_vm7 = vweird.f32 %v1494_v18 }
 0x232   :  { %v1426_v22 = vmul.f32 %v1496_v19, %v1379_v10  ;;  %vm1431_vm9 = vweird.f32 %v1496_v19  ;;  %vm1417_vm13 = vmor %vm1415_vm10, %vm1416_vm7  ;;  %v1388_v46 = vsel %vm3221_vm11, %v3205_v9, %v1384_v36 }
 0x233   :  { %v1412_v26 = vsub.f32 1.0, %v1411_v20  ;;  %v1403_v32 = vsel %vm3211_vm4, %v1492_v11, %v1399_v21  ;;  %vm1432_vm15 = vmor %vm1430_vm12, %vm1431_vm9  ;;  %v1393_v54 = vsel %vm1390_vm2, %v1392_v50, %v1388_v46 }
 0x234   :  { %v1427_v30 = vsub.f32 1.0, %v1426_v22  ;;  %v1408_v39 = vsel %vm1405_vm8, %v1407_v25, %v1403_v32 }
 0x235   :  { %v1413_v31 = vmul.f32 %v1494_v18, %v1412_v26  ;;  %v1444_v49 = vrot.slane %v1408_v39, 6 }
 0x236   :  { %v1428_v35 = vmul.f32 %v1496_v19, %v1427_v30 }
 0x237   :  { %v1414_v40 = vadd.f32 %v1494_v18, %v1413_v31  ;;  %v1448_v55 = vsel %vm1447_vm5, %v1393_v54, %v1444_v49 }
 0x238   :  { %v1429_v43 = vadd.f32 %v1496_v19, %v1428_v35 }
 0x239   :  { %v1418_v45 = vsel %vm1417_vm13, %v1494_v18, %v1414_v40 }
 0x23a   :  { %v1423_v47 = vsel %vm1420_vm14, %v1422_v41, %v1418_v45  ;;  %v1433_v48 = vsel %vm1432_vm15, %v1496_v19, %v1429_v43 }
 0x23b   :  { %v1438_v51 = vsel %vm1435_vm0, %v1437_v44, %v1433_v48  ;;  %v1445_v52 = vrot.slane %v1423_v47, 4 }
 0x23c   :  { %v1446_v53 = vrot.slane %v1438_v51, 2 }
 0x23e   :  { %v1450_v56 = vsel %vm1449_vm1, %v1445_v52, %v1446_v53 }
 0x23f   :  { %v1452_v57 = vsel %vm1451_vm3, %v1448_v55, %v1450_v56 }
 0x240   :  { %1454 = vst [vmem:[#allocation2] sm:$0xff] %v1452_v57 }
 0x241   :  { %1465 = dma.vmem_to_hbm [thread:$0]  %s1461_s12, 128, %s1463_s15, [#allocation3]  }
 0x242   :  { %1521 = dma.done.wait [#allocation3], 128  }
 0x243   :  { %1522 = vsyncadd [#allocation3], 4294967168 }
 0x244   :  { %1470 = vsyncpa [#allocation3], 1 }

</bundles_post_ra>
